<compile_context>
chip_gen: v5e
topology: v5e:2x2
jax: 0.10.0
libtpu: 0.0.40
codegen_flags: <defaults>
</compile_context>

<pallas_src>
import functools

import jax
import jax.numpy as jnp
from jax.experimental import pallas as pl
from jax.experimental.pallas import tpu as pltpu


# ----------------------------- Pallas kernel --------------------------------

def _affine_rowstat_kernel(x_ref, stat_ref, o_ref):
    # y = x * scale + shift, per-row scale/shift packed as a (rows, 2) tile.
    stat = stat_ref[...]
    scale = stat[:, 0:1]          # (rows, 1), broadcasts across the lane axis
    shift = stat[:, 1:2]
    o_ref[...] = (x_ref[...] * scale + shift).astype(o_ref.dtype)


@functools.lru_cache(maxsize=None)
def _default_target_block_bytes():
    """Generation-aware per-block byte target (conservative fallback 2 MiB)."""
    try:
        kind = jax.devices()[0].device_kind.lower()
    except Exception:
        return 2 << 20
    if "v7" in kind:
        return 6 << 20   # 3.2 TB/s HBM: amortize the ~0.35 us/step overhead
    if "v6" in kind:
        return 4 << 20   # 32 MiB scoped-VMEM default: 2*(4+4) MiB buffers fit
    return 2 << 20       # v5e & older/unknown: tightest scoped default (16 MiB)


def _round_down(x, m):
    return (x // m) * m


def _round_up(x, m):
    return -(-x // m) * m


def _choose_tiles(R, L, itemsize, target_block_bytes):
    """Pick (row_block, lane_block): block bytes <= target, lane_block a
    multiple of 128 (or == L), row_block a multiple of the sublane granule
    (or == R), and >= 2 grid blocks whenever the array can be split."""
    sub = 8 * max(1, 4 // itemsize)   # sublane granule: 8 f32, 16 bf16, 32 i8

    # Lane tile: full width when `sub` rows of it fit the target; otherwise
    # shrink to a multiple of 128 so a (sub, lane_block) block meets the target.
    if L <= 128 or sub * L * itemsize <= target_block_bytes:
        lane_block = L
    else:
        lane_block = _round_down(target_block_bytes // (sub * itemsize), 128)
        lane_block = max(128, min(lane_block, L))

    # Row tile: as many sublane groups as fit in the target (never overshoots).
    rows = target_block_bytes // (lane_block * itemsize)
    rows = max(sub, _round_down(rows, sub))
    row_block = R if rows >= R else rows

    # Guarantee >= 2 blocks along a "parallel" axis (megacore + pipelining).
    if pl.cdiv(R, row_block) * pl.cdiv(L, lane_block) < 2:
        if R >= 2 * sub:
            row_block = _round_up(pl.cdiv(R, 2), sub)
        elif L >= 256:
            lane_block = _round_up(pl.cdiv(L, 2), 128)
    return row_block, lane_block


def _affine_rows_pallas(x2d, scale_rows, shift_rows, *, target_block_bytes=None):
    """Tiled elementwise affine: (R, L) input, per-row (R,) scale/shift."""
    R, L = x2d.shape
    itemsize = x2d.dtype.itemsize
    if target_block_bytes is None:
        target_block_bytes = _default_target_block_bytes()

    # bf16 activations compute natively in bf16 (v6e/v7x VPUs); otherwise f32.
    stat_dtype = jnp.bfloat16 if x2d.dtype == jnp.bfloat16 else jnp.float32
    stats = jnp.stack(
        [scale_rows.astype(stat_dtype), shift_rows.astype(stat_dtype)], axis=-1)

    row_block, lane_block = _choose_tiles(R, L, itemsize, target_block_bytes)
    grid = (pl.cdiv(R, row_block), pl.cdiv(L, lane_block))

    cost = pl.CostEstimate(
        flops=2 * R * L,
        transcendentals=0,
        bytes_accessed=2 * R * L * itemsize + 2 * R * stats.dtype.itemsize,
    )

    return pl.pallas_call(
        _affine_rowstat_kernel,
        out_shape=jax.ShapeDtypeStruct((R, L), x2d.dtype),
        grid=grid,
        in_specs=[
            pl.BlockSpec((row_block, lane_block), lambda i, j: (i, j)),
            # Stats follow the ROW grid index only: one tiny DMA per step.
            pl.BlockSpec((row_block, 2), lambda i, j: (i, 0)),
        ],
        out_specs=pl.BlockSpec((row_block, lane_block), lambda i, j: (i, j)),
        compiler_params=pltpu.CompilerParams(
            dimension_semantics=("parallel", "parallel")),
        cost_estimate=cost,
    )(x2d, stats)


# ------------------------- Module-level glue (JAX) ---------------------------

MEAN_STD = "MEAN_STD"
MIN_MAX = "MIN_MAX"
IDENTITY = "IDENTITY"

STATE = "STATE"
VISUAL = "VISUAL"
ACTION = "ACTION"

# Tensors smaller than this take the plain-jnp path (fused by XLA): the Pallas
# launch + near-(1,1) grid costs more than the entire HBM traffic (per review).
_PALLAS_MIN_BYTES = 1 << 20


class UnnormalizePallas:
    """JAX/Pallas port of the PyTorch Unnormalize module."""

    def __init__(self, features, norm_map, stats):
        self.features = features        # {key: (feature_type, shape)}
        self.norm_map = norm_map        # {feature_type: norm_mode}

        # Canonicalize both modes to a single affine y = x*scale + shift.
        # (MIN_MAX:  ((x+1)/2)*(max-min)+min == x*(max-min)/2 + (max+min)/2)
        self._affine = {}
        for key, (ftype, _) in features.items():
            mode = norm_map.get(ftype, IDENTITY)
            if mode == IDENTITY:
                continue
            buf = stats[key]
            if mode == MEAN_STD:
                scale = jnp.asarray(buf["std"], jnp.float32).reshape(-1)
                shift = jnp.asarray(buf["mean"], jnp.float32).reshape(-1)
            else:  # MIN_MAX
                mx = jnp.asarray(buf["max"], jnp.float32).reshape(-1)
                mn = jnp.asarray(buf["min"], jnp.float32).reshape(-1)
                scale = (mx - mn) * 0.5
                shift = (mx + mn) * 0.5
            self._affine[key] = (scale, shift)

        self._forward = jax.jit(self._forward_impl)

    def _forward_impl(self, batch):
        out = dict(batch)
        for key, (ftype, _) in self.features.items():
            if key not in self._affine:
                continue  # IDENTITY: pass-through
            x = out[key]
            scale, shift = self._affine[key]

            if ftype == VISUAL and x.nbytes >= _PALLAS_MIN_BYTES:
                # (..., C, H, W) -> (lead*C, H*W): spatial on the lane axis,
                # per-channel stats become per-row scale/shift.
                *lead, C, H, W = x.shape
                nlead = 1
                for d in lead:
                    nlead *= d
                x2d = x.reshape(nlead * C, H * W)
                scale_rows = jnp.tile(scale, (nlead,))
                shift_rows = jnp.tile(shift, (nlead,))
                y2d = _affine_rows_pallas(x2d, scale_rows, shift_rows)
                out[key] = y2d.reshape(x.shape)
            else:
                # Small features (state/action vectors, sub-1MiB images):
                # plain jnp fused by XLA — launch overhead would dominate.
                if ftype == VISUAL:
                    bshape = (1,) * (x.ndim - 3) + (scale.shape[0], 1, 1)
                else:
                    bshape = (1,) * (x.ndim - 1) + (scale.shape[0],)
                y = (x.astype(jnp.float32) * scale.reshape(bshape)
                     + shift.reshape(bshape))
                out[key] = y.astype(x.dtype)
        return out

    def __call__(self, batch):
        return self._forward(batch)


# --------------------------------- Demo --------------------------------------

if __name__ == "__main__":
    key = jax.random.PRNGKey(0)

    # ---- 1) Direct Pallas-kernel smoke test (multi-block tiled path) --------
    R, L = 512, 1024                      # 2 MiB f32 -> split into >=2 blocks
    k1, k2, k3 = jax.random.split(key, 3)
    x2d = jax.random.normal(k1, (R, L), jnp.float32)
    scale_rows = jax.random.uniform(k2, (R,), jnp.float32, minval=0.5, maxval=1.5)
    shift_rows = jax.random.uniform(k3, (R,), jnp.float32, minval=-1.0, maxval=1.0)

    y = jax.block_until_ready(_affine_rows_pallas(x2d, scale_rows, shift_rows))
    ref = x2d * scale_rows[:, None] + shift_rows[:, None]
    assert jnp.allclose(y, ref, atol=1e-5, rtol=1e-5)

    # bf16 path (native bf16 compute, output dtype preserved).
    y_bf16 = jax.block_until_ready(
        _affine_rows_pallas(x2d.astype(jnp.bfloat16), scale_rows, shift_rows))
    assert y_bf16.dtype == jnp.bfloat16
    assert jnp.allclose(y_bf16.astype(jnp.float32), ref, atol=0.1, rtol=0.05)

    # ---- 2) Module-level demo -----------------------------------------------
    B, C, H, W = 2, 4, 16, 16             # small image -> fused jnp path
    HL, WL = 128, 512                     # 2 MiB image   -> Pallas path
    D_STATE, D_ACTION = 8, 8

    features = {
        "observation.image": (VISUAL, (C, H, W)),
        "observation.image_hires": (VISUAL, (C, HL, WL)),
        "observation.state": (STATE, (D_STATE,)),
        "action": (ACTION, (D_ACTION,)),
    }
    norm_map = {VISUAL: MEAN_STD, STATE: MIN_MAX, ACTION: IDENTITY}

    stats = {
        "observation.image": {
            "mean": (0.1 * jnp.arange(C, dtype=jnp.float32) + 0.25).reshape(C, 1, 1),
            "std": (0.2 * jnp.arange(C, dtype=jnp.float32) + 0.5).reshape(C, 1, 1),
        },
        "observation.image_hires": {
            "mean": (0.05 * jnp.arange(C, dtype=jnp.float32) - 0.1).reshape(C, 1, 1),
            "std": (0.3 * jnp.arange(C, dtype=jnp.float32) + 0.4).reshape(C, 1, 1),
        },
        "observation.state": {
            "min": -1.0 * jnp.arange(1, D_STATE + 1, dtype=jnp.float32),
            "max": 2.0 * jnp.arange(1, D_STATE + 1, dtype=jnp.float32),
        },
    }

    k4, k5, k6, k7 = jax.random.split(jax.random.fold_in(key, 1), 4)
    batch = {
        "observation.image": jax.random.normal(k4, (B, C, H, W), jnp.float32),
        "observation.image_hires": jax.random.normal(k7, (B, C, HL, WL), jnp.float32),
        "observation.state": jax.random.uniform(k5, (B, D_STATE), jnp.float32,
                                                minval=-1.0, maxval=1.0),
        "action": jax.random.normal(k6, (B, D_ACTION), jnp.float32),
    }

    module = UnnormalizePallas(features, norm_map, stats)
    out = module(batch)
    out = jax.tree_util.tree_map(jax.block_until_ready, out)

    # Pure-JAX references using the ORIGINAL formulas (not canonicalized).
    ref_img = (batch["observation.image"]
               * stats["observation.image"]["std"][None]
               + stats["observation.image"]["mean"][None])
    ref_img_hi = (batch["observation.image_hires"]
                  * stats["observation.image_hires"]["std"][None]
                  + stats["observation.image_hires"]["mean"][None])
    mn = stats["observation.state"]["min"][None]
    mx = stats["observation.state"]["max"][None]
    ref_state = ((batch["observation.state"] + 1.0) / 2.0) * (mx - mn) + mn

    assert jnp.allclose(out["observation.image"], ref_img, atol=1e-5, rtol=1e-5)
    assert jnp.allclose(out["observation.image_hires"], ref_img_hi,
                        atol=1e-5, rtol=1e-5)
    assert jnp.allclose(out["observation.state"], ref_state, atol=1e-5, rtol=1e-5)
    assert jnp.allclose(out["action"], batch["action"])
    assert out["observation.image"].shape == (B, C, H, W)
    assert out["observation.image_hires"].shape == (B, C, HL, WL)
    assert out["observation.image"].dtype == batch["observation.image"].dtype

    print("KERNEL_OK")
</pallas_src>

<mosaic_0001>
module attributes {stable_mosaic.version = 11 : i64} {
  func.func @_affine_rowstat_kernel(%arg0: i32, %arg1: i32, %arg2: memref<256x1024xf32, #tpu.memory_space<vmem>>, %arg3: memref<256x2xf32, #tpu.memory_space<vmem>>, %arg4: memref<256x1024xf32, #tpu.memory_space<vmem>>) attributes {dimension_semantics = [#tpu.dimension_semantics<parallel>, #tpu.dimension_semantics<parallel>], iteration_bounds = array<i64: 2, 1>, scalar_prefetch = 0 : i64, scratch_operands = 0 : i64, tpu.core_type = #tpu.core_type<tc>, window_params = [{transform_indices = @transform_0, window_bounds = array<i64: 256, 1024>}, {transform_indices = @transform_1, window_bounds = array<i64: 256, 2>}, {transform_indices = @transform_2, window_bounds = array<i64: 256, 1024>}]} {
    %c0 = arith.constant 0 : index
    %c0_0 = arith.constant 0 : index
    %0 = vector.load %arg3[%c0, %c0_0] : memref<256x2xf32, #tpu.memory_space<vmem>>, vector<256x2xf32>
    %1 = vector.extract_strided_slice %0 {offsets = [0, 0], sizes = [256, 1], strides = [1, 1]} : vector<256x2xf32> to vector<256x1xf32>
    %2 = vector.extract_strided_slice %0 {offsets = [0, 1], sizes = [256, 1], strides = [1, 1]} : vector<256x2xf32> to vector<256x1xf32>
    %c0_1 = arith.constant 0 : index
    %c0_2 = arith.constant 0 : index
    %3 = vector.load %arg2[%c0_1, %c0_2] : memref<256x1024xf32, #tpu.memory_space<vmem>>, vector<256x1024xf32>
    %4 = vector.broadcast %1 : vector<256x1xf32> to vector<256x1024xf32>
    %5 = arith.mulf %3, %4 : vector<256x1024xf32>
    %6 = vector.broadcast %2 : vector<256x1xf32> to vector<256x1024xf32>
    %7 = arith.addf %5, %6 : vector<256x1024xf32>
    %c0_3 = arith.constant 0 : index
    %c0_4 = arith.constant 0 : index
    %8 = vector.load %arg4[%c0_3, %c0_4] : memref<256x1024xf32, #tpu.memory_space<vmem>>, vector<256x1024xf32>
    tpu.vector_store %arg4[%c0_3, %c0_4], %7 {strides = array<i32>} : memref<256x1024xf32, #tpu.memory_space<vmem>>, vector<256x1024xf32>,
    return
  }
  func.func @transform_0(%arg0: i32, %arg1: i32) -> (i32, i32) {
    %c0_i32 = arith.constant 0 : i32
    return %arg0, %arg1 : i32, i32
  }
  func.func @transform_1(%arg0: i32, %arg1: i32) -> (i32, i32) {
    %c0_i32 = arith.constant 0 : i32
    %c0_i32_0 = arith.constant 0 : i32
    return %arg0, %c0_i32 : i32, i32
  }
  func.func @transform_2(%arg0: i32, %arg1: i32) -> (i32, i32) {
    %c0_i32 = arith.constant 0 : i32
    return %arg0, %arg1 : i32, i32
  }
}

</mosaic_0001>

<bundles_post_ra>
// kernel: tpu_custom_call.1
= control target key start
LH: loop header
LB: loop body
LE: loop exit
PB: predicated region body
PF: predicated region fallthrough
CT: control target
= control target key end

     0   :  { %7 = vsyncpa [#allocation3], 0  ;;  %s2944_s0 = inlined_call_operand.hbm [shape: f32[512,1024], index: 0, kind: input, shape index: {}]   ;;  %s2945_s1 = inlined_call_operand.vmem [shape: f32[512,2], index: 1, kind: input, shape index: {}]   ;;  %s2946_s2 = inlined_call_operand.hbm [shape: f32[512,1024], index: 2, kind: output, shape index: {}]  }
   0x1   :  { %9 = vsyncpa [#allocation3 + $0x1], 0 }
   0x2   :  { %10 = vsyncpa [#allocation4], 0 }
   0x3   :  { %12 = vsyncpa [#allocation4 + $0x1], 0  ;;  %s1903_s9 = smov 0   ;;  %s1905_s10 = smov 0  }
   0x4   :  { %s1907_s11 = smov 0   ;;  %s1909_s12 = smov 0  }
   0x5   :  { %s1911_s13 = smov 0   ;;  %s1913_s14 = smov 0  }
   0x6 LB: > { %s1671_s15 = sadd.s32 4294967295, %s1880_s14   ;;  %s1672_s16 = sadd.s32 4294967294, %s1880_s14   ;;  %s1880_s14 = sphi %s1913_s14, %s18_s14   ;;  %s1876_s13 = sphi %s1911_s13, %s2955_s13   ;;  %s1872_s12 = sphi %s1909_s12, %s2954_s12   ;;  %s1868_s11 = sphi %s1907_s11, %s2953_s11   ;;  %s1864_s10 = sphi %s1905_s10, %s2952_s10   ;;  %s1860_s9 = sphi %s1903_s9, %s2951_s9  }
   0x7   : > { %s30_s17 = sadd.s32 1, %s1876_s13  ;;  %s39_s18 = sadd.s32 1, %s1868_s11 }
   0x8   : > { %p32_p0 = scmp.ge.s32.totalorder %s30_s17, 2  ;;  %p46_p1 = scmp.ne.s32.totalorder %s1868_s11, %s1864_s10 }
   0x9   : > { %p47_p2 = scmp.eq.s32.totalorder %s1880_s14, 0  ;;  %p52_p3 = scmp.ne.s32.totalorder %s1864_s10, %s1860_s9 }
   0xa   : > { %s2957_s17 = smov (%p32_p0, %s30_s17), 0  ;;  %p53_p5 = scmp.eq.s32.totalorder %s1671_s15, 0 }
   0xb   : > { %p1944_p4 = por %p47_p2, %p46_p1  ;;  %s34_s20 = ssub.s32 %s1876_s13, %s2957_s17 }
   0xc   : > { %p104_p6 = scmp.eq.s32.totalorder %s1671_s15, 1  ;;  %p37_p7 = scmp.eq.s32.totalorder %s34_s20, 0 }
   0xd   : > { %p1950_p8 = por %p53_p5, %p52_p3  ;;  %p110_p10 = scmp.eq.s32.totalorder %s1672_s16, 1 }
   0xe   : > { %p1954_p9 = por %p104_p6, %p46_p1  ;;  %p1674_p12 = scmp.ge.s32.totalorder %s1880_s14, 2 }
   0xf   : > { %s1959_s23 = scalar_select %p37_p7, %s1868_s11, %s39_s18  }
  0x10   : > { %p1961_p11 = por %p110_p10, %p52_p3  ;;  %p1706_p13 = scmp.lt.s32.totalorder %s1880_s14, 2 }
  0x11   : > { %s130_s25 = sand.u32 1, %s1868_s11   ;;  %s1691_s27 = sshll.u32 %s1876_s13, 11 }
  0x12   : > { %s1675_s26 = sshll.u32 %s130_s25, 11  ;;  %s142_s30 = scalar_lea.hbm %s2944_s0, %s1691_s27 }
  0x13   : > { %s134_s3 = scalar_lea.vmem [#allocation2], %s1675_s26  ;;  %s143_s5 = sshll.u32 %s142_s30, 4  ;;  %s144_s5 = int_to_ptr.hbm [resolvable:$true] %s143_s5 }
  0x14   : > { %s145_s4 = sshll.u32 %s134_s3, 4  ;;  %p1699_p0 = pnand %p1706_p13, %p1944_p4  ;;  %s146_s4 = int_to_ptr.vmem [resolvable:$true] %s145_s4 }
  0x15   : > { %p1679_p1 = scmp.ge.s32.totalorder %s1880_s14, 1  ;;  %s131_s6 = scalar_lea.sflag [#allocation3], %s130_s25 }
  0x16   : > { %s1882_s7 = smov 1024   ;;  %s1883_s8 = smov 64  }
  0x17   : > { %1701 = dma.hbm_to_vmem [thread:$0]  (!%p1699_p0), %s144_s5, 32768, %s146_s4, %s131_s6, %s1882_s7, %s1882_s7, %s1883_s8  }
  0x18   : > { %p162_p2 = scmp.lt.s32.totalorder %s1880_s14, 3 }
  0x1a   : > { %p163_p3 = pnand %p1679_p1, %p162_p2 }
  0x1b   : > { %s1977_s15 = sand.u32 (!%p163_p3), 1, %s1864_s10  }
  0x1c   : > { %166 = sbr.rel (%p163_p3) target bundleno = 475 (0x1db), region = 28  ;;  %s1680_s16 = sshll.u32 (!%p163_p3), %s1977_s15, 11 }
  0x1d   : > { %s169_s18 = scalar_lea.sflag (!%p163_p3), [#allocation3], %s1977_s15  ;;  %s1983_s19 = scalar_lea.vmem (!%p163_p3), [#allocation2], %s1680_s16 }
  0x21   : > { %1851 = dma.done.wait (%p1950_p8), %s169_s18, 32768  }
  0x22   : > { %1853 = vsyncadd (%p1950_p8), %s169_s18, 4294934528  ;;  %s1682_s20 = sshll.u32 %s1872_s12, 5  ;;  %v1884_v0 = vmov 0   ;;  %v1885_v33 = vmov 1   ;;  %v241_v58 = vld [vmem:[%s1983_s19] sm:$0xff]  ;;  %v242_v59 = vld [vmem:[%s1983_s19 + $0x8] sm:$0xff] }
  0x23   : > { %1764 = vset.pattern.permute.xlu2 %v1884_v0  ;;  %1763 = vset.pattern.permute.xlu1 %v1884_v0  ;;  %p202_p4 = scmp.lt.s32.totalorder %s1682_s20, 63  ;;  %v243_v60 = vld [vmem:[%s1983_s19 + $0x10] sm:$0xff]  ;;  %v244_v62 = vld [vmem:[%s1983_s19 + $0x18] sm:$0xff]  ;;  %s2137_s21 = scalar_lea.vmem [#allocation5], %s1680_s16 }
  0x24   : > { %1762 = vset.pattern.permute.xlu0 %v1884_v0  ;;  %v245_v0 = vld [vmem:[%s1983_s19 + $0x20] sm:$0xff]  ;;  %s1693_s29 = sshll.u32 %s1872_s12, 11  ;;  %s1569_s4 = sshll.u32 %s2137_s21, 4  ;;  %s1570_s4 = int_to_ptr.vmem [resolvable:$true] %s1569_s4 }
  0x25   : > { %s2959_s20 = smov (!%p202_p4, %s1682_s20), 63  ;;  %s1568_s3 = scalar_lea.hbm %s2946_s2, %s1693_s29 }
  0x26   : > { %s1683_s25 = sshll.u32 %s2959_s20, 3  ;;  %s1571_s5 = sshll.u32 %s1568_s3, 4  ;;  %s1572_s5 = int_to_ptr.hbm [resolvable:$true] %s1571_s5 }
  0x27   : > { %s1993_s28 = scalar_lea.vmem %s2945_s1, %s1683_s25  ;;  %s1554_s6 = scalar_lea.sflag [#allocation4], %s1977_s15 }
  0x28   : > { %v1996_v1 = vld [vmem:[%s1993_s28 + $0x20] sm:$0xff]  ;;  %v1999_v2 = vld [vmem:[%s1993_s28 + $0x10] sm:$0xff]  ;;  %v2008_v4 = vld [vmem:[%s1993_s28 + $0x28] sm:$0xff]  ;;  %s1812_s7 = sshra.s32 %s1572_s5, 4  ;;  %s1813_s7 = int_to_ptr.hbm [resolvable:$true] %s1812_s7 }
  0x29   : > { %v2002_v3 = vld [vmem:[%s1993_s28] sm:$0xff]  ;;  %519 = vperm.xlu2 %1764, %v1996_v1   ;;  %509 = vperm.xlu1 %1763, %v1999_v2   ;;  %v212_v5 = vld [vmem:[%s1993_s28 + $0x18] sm:$0xff]  ;;  %v210_v6 = vld [vmem:[%s1993_s28 + $0x8] sm:$0xff]  ;;  %s1814_s8 = scalar_lea.hbm %s1813_s7, 2048  ;;  %p1819_p8 = scmp.lt.s32.totalorder %s1813_s7, %s2946_s2 }
  0x2a   : > { %499 = vperm.xlu0 %1762, %v2002_v3   ;;  %v2014_v7 = vld [vmem:[%s1993_s28 + $0x40] sm:$0xff]  ;;  %v2017_v8 = vld [vmem:[%s1993_s28 + $0x38] sm:$0xff]  ;;  %v215_v9 = vld [vmem:[%s1993_s28 + $0x30] sm:$0xff]  ;;  %p1815_p5 = scmp.ne.s32.totalorder %s1813_s7, %s1814_s8 }
  0x2b   : > { %v2023_v10 = vld [vmem:[%s1993_s28 + $0x58] sm:$0xff]  ;;  %v219_v11 = vld [vmem:[%s1993_s28 + $0x50] sm:$0xff]  ;;  %v218_v12 = vld [vmem:[%s1993_s28 + $0x48] sm:$0xff] }
  0x2c   : > { %v2029_v13 = vld [vmem:[%s1993_s28 + $0x70] sm:$0xff]  ;;  %v222_v14 = vld [vmem:[%s1993_s28 + $0x68] sm:$0xff]  ;;  %v221_v15 = vld [vmem:[%s1993_s28 + $0x60] sm:$0xff]  ;;  %p1816_p6 = pnand %p1815_p5, %p1954_p9 }
  0x2d   : > { %v2035_v16 = vld [vmem:[%s1993_s28 + $0x88] sm:$0xff]  ;;  %v225_v17 = vld [vmem:[%s1993_s28 + $0x80] sm:$0xff]  ;;  %v224_v18 = vld [vmem:[%s1993_s28 + $0x78] sm:$0xff] }
  0x2e   : > { %v2041_v19 = vld [vmem:[%s1993_s28 + $0xa0] sm:$0xff]  ;;  %v228_v20 = vld [vmem:[%s1993_s28 + $0x98] sm:$0xff]  ;;  %v227_v21 = vld [vmem:[%s1993_s28 + $0x90] sm:$0xff]  ;;  %p1817_p7 = pneg %p1816_p6 }
  0x2f   : > { %v2047_v22 = vld [vmem:[%s1993_s28 + $0xb8] sm:$0xff]  ;;  %v231_v23 = vld [vmem:[%s1993_s28 + $0xb0] sm:$0xff]  ;;  %v230_v24 = vld [vmem:[%s1993_s28 + $0xa8] sm:$0xff] }
  0x30   : > { %v2053_v25 = vld [vmem:[%s1993_s28 + $0xd0] sm:$0xff]  ;;  %v234_v26 = vld [vmem:[%s1993_s28 + $0xc8] sm:$0xff]  ;;  %v233_v27 = vld [vmem:[%s1993_s28 + $0xc0] sm:$0xff] }
  0x31   : > { %524 = vperm.xlu2 %1764, %v2008_v4   ;;  %514 = vperm.xlu1 %1763, %v212_v5   ;;  %v2059_v28 = vld [vmem:[%s1993_s28 + $0xe8] sm:$0xff]  ;;  %v237_v29 = vld [vmem:[%s1993_s28 + $0xe0] sm:$0xff]  ;;  %v236_v30 = vld [vmem:[%s1993_s28 + $0xd8] sm:$0xff] }
  0x32   : > { %504 = vperm.xlu0 %1762, %v210_v6   ;;  %v240_v31 = vld [vmem:[%s1993_s28 + $0xf8] sm:$0xff]  ;;  %v239_v32 = vld [vmem:[%s1993_s28 + $0xf0] sm:$0xff] }
  0x39   : > { %539 = vperm.xlu2 %1764, %v2014_v7   ;;  %534 = vperm.xlu1 %1763, %v2017_v8  }
  0x3a   : > { %529 = vperm.xlu0 %1762, %v215_v9  }
  0x41   : > { %554 = vperm.xlu2 %1764, %v2023_v10   ;;  %549 = vperm.xlu1 %1763, %v219_v11  }
  0x42   : > { %544 = vperm.xlu0 %1762, %v218_v12  }
  0x49   : > { %569 = vperm.xlu2 %1764, %v2029_v13   ;;  %564 = vperm.xlu1 %1763, %v222_v14  }
  0x4a   : > { %559 = vperm.xlu0 %1762, %v221_v15  }
  0x51   : > { %584 = vperm.xlu2 %1764, %v2035_v16   ;;  %579 = vperm.xlu1 %1763, %v225_v17  }
  0x52   : > { %574 = vperm.xlu0 %1762, %v224_v18  }
  0x59   : > { %599 = vperm.xlu2 %1764, %v2041_v19   ;;  %594 = vperm.xlu1 %1763, %v228_v20  }
  0x5a   : > { %589 = vperm.xlu0 %1762, %v227_v21  }
  0x61   : > { %614 = vperm.xlu2 %1764, %v2047_v22   ;;  %609 = vperm.xlu1 %1763, %v231_v23  }
  0x62   : > { %604 = vperm.xlu0 %1762, %v230_v24  }
  0x69   : > { %629 = vperm.xlu2 %1764, %v2053_v25   ;;  %624 = vperm.xlu1 %1763, %v234_v26  }
  0x6a   : > { %619 = vperm.xlu0 %1762, %v233_v27  }
  0x71   : > { %644 = vperm.xlu2 %1764, %v2059_v28   ;;  %639 = vperm.xlu1 %1763, %v237_v29  }
  0x72   : > { %634 = vperm.xlu0 %1762, %v236_v30  }
  0x79   : > { %1765 = vset.pattern.permute.xlu2 %v1885_v33  ;;  %654 = vperm.xlu1 %1763, %v240_v31  }
  0x7a   : > { %649 = vperm.xlu0 %1762, %v239_v32   ;;  %914 = vperm.xlu2 %1765, %v2002_v3  }
  0x81   : > { %1767 = vset.pattern.permute.xlu1 %v1885_v33 }
  0x82   : > { %1766 = vset.pattern.permute.xlu0 %v1885_v33  ;;  %922 = vperm.xlu1 %1767, %v1999_v2  }
  0x83   : > { %926 = vperm.xlu2 %1765, %v212_v5   ;;  %918 = vperm.xlu0 %1766, %v210_v6   ;;  %v2068_v34 = vpop.permute.xlu2 %519  ;;  %v247_v5 = vld [vmem:[%s1983_s19 + $0x30] sm:$0xff] }
  0x8a   : > { %930 = vperm.xlu1 %1767, %v1996_v1   ;;  %v246_v1 = vld [vmem:[%s1983_s19 + $0x28] sm:$0xff] }
  0x8b   : > { %934 = vperm.xlu2 %1765, %v2008_v4   ;;  %938 = vperm.xlu0 %1766, %v215_v9   ;;  %v2072_v35 = vpop.permute.xlu2 %524 }
  0x92   : > { %942 = vperm.xlu1 %1767, %v2017_v8  }
  0x93   : > { %946 = vperm.xlu2 %1765, %v2014_v7   ;;  %950 = vperm.xlu0 %1766, %v218_v12   ;;  %v2076_v36 = vpop.permute.xlu2 %539  ;;  %v248_v7 = vld [vmem:[%s1983_s19 + $0x38] sm:$0xff] }
  0x9a   : > { %954 = vperm.xlu1 %1767, %v219_v11  }
  0x9b   : > { %958 = vperm.xlu2 %1765, %v2023_v10   ;;  %962 = vperm.xlu0 %1766, %v221_v15   ;;  %v2079_v37 = vpop.permute.xlu2 %554  ;;  %v2081_v38 = vpop.permute.xlu1 %509 }
  0x9c   : > { %v500_v39 = vpop.permute.xlu0 %499 }
  0x9d   : > { %v657_v2 = vmul.f32 %v500_v39, %v241_v58  ;;  %v658_v3 = vmul.f32 %v500_v39, %v242_v59  ;;  %v659_v4 = vmul.f32 %v500_v39, %v243_v60  ;;  %v660_v6 = vmul.f32 %v500_v39, %v244_v62 }
  0x9e   : > { %v661_v8 = vmul.f32 %v500_v39, %v245_v0  ;;  %v662_v12 = vmul.f32 %v500_v39, %v246_v1 }
  0xa2   : > { %966 = vperm.xlu1 %1767, %v222_v14   ;;  %v663_v14 = vmul.f32 %v500_v39, %v247_v5  ;;  %v283_v5 = vld [vmem:[%s1983_s19 + $0x150] sm:$0xff] }
  0xa3   : > { %970 = vperm.xlu2 %1765, %v2029_v13   ;;  %974 = vperm.xlu0 %1766, %v224_v18   ;;  %v2084_v40 = vpop.permute.xlu2 %569  ;;  %v2086_v41 = vpop.permute.xlu1 %514  ;;  %v266_v18 = vld [vmem:[%s1983_s19 + $0xc8] sm:$0xff] }
  0xa4   : > { %v2088_v42 = vpop.permute.xlu0 %504 }
  0xaa   : > { %978 = vperm.xlu1 %1767, %v225_v17   ;;  %v265_v17 = vld [vmem:[%s1983_s19 + $0xc0] sm:$0xff] }
  0xab   : > { %982 = vperm.xlu2 %1765, %v2035_v16   ;;  %986 = vperm.xlu0 %1766, %v227_v21   ;;  %v2091_v43 = vpop.permute.xlu2 %584  ;;  %v2093_v44 = vpop.permute.xlu1 %534  ;;  %v664_v16 = vmul.f32 %v500_v39, %v248_v7  ;;  %v272_v39 = vld [vmem:[%s1983_s19 + $0xf8] sm:$0xff] }
  0xac   : > { %v2095_v45 = vpop.permute.xlu0 %529 }
  0xb2   : > { %990 = vperm.xlu1 %1767, %v228_v20  }
  0xb3   : > { %994 = vperm.xlu2 %1765, %v2041_v19   ;;  %998 = vperm.xlu0 %1766, %v230_v24   ;;  %v2098_v46 = vpop.permute.xlu2 %599  ;;  %v2100_v47 = vpop.permute.xlu1 %549  ;;  %v267_v19 = vld [vmem:[%s1983_s19 + $0xd0] sm:$0xff] }
  0xb4   : > { %v2102_v48 = vpop.permute.xlu0 %544 }
  0xba   : > { %1002 = vperm.xlu1 %1767, %v231_v23   ;;  %v268_v23 = vld [vmem:[%s1983_s19 + $0xd8] sm:$0xff] }
  0xbb   : > { %1006 = vperm.xlu2 %1765, %v2047_v22   ;;  %1010 = vperm.xlu0 %1766, %v233_v27   ;;  %v2105_v49 = vpop.permute.xlu2 %614  ;;  %v2107_v50 = vpop.permute.xlu1 %564  ;;  %v684_v33 = vmul.f32 %v2086_v41, %v268_v23 }
  0xbc   : > { %v2109_v51 = vpop.permute.xlu0 %559 }
  0xc2   : > { %1014 = vperm.xlu1 %1767, %v234_v26  }
  0xc3   : > { %1018 = vperm.xlu2 %1765, %v2053_v25   ;;  %1022 = vperm.xlu0 %1766, %v236_v30   ;;  %v2112_v52 = vpop.permute.xlu2 %629  ;;  %v2114_v53 = vpop.permute.xlu1 %579  ;;  %v269_v25 = vld [vmem:[%s1983_s19 + $0xe0] sm:$0xff]  ;;  %v682_v30 = vmul.f32 %v2086_v41, %v266_v18  ;;  %v287_v18 = vld [vmem:[%s1983_s19 + $0x170] sm:$0xff] }
  0xc4   : > { %v2116_v54 = vpop.permute.xlu0 %574  ;;  %v685_v58 = vmul.f32 %v2086_v41, %v269_v25 }
  0xca   : > { %1026 = vperm.xlu1 %1767, %v237_v29   ;;  %v681_v29 = vmul.f32 %v2086_v41, %v265_v17  ;;  %v699_v17 = vmul.f32 %v2072_v35, %v283_v5 }
  0xcb   : > { %1030 = vperm.xlu2 %1765, %v2059_v28   ;;  %1034 = vperm.xlu0 %1766, %v239_v32   ;;  %v2119_v55 = vpop.permute.xlu2 %644  ;;  %v2121_v56 = vpop.permute.xlu1 %594  ;;  %v270_v28 = vld [vmem:[%s1983_s19 + $0xe8] sm:$0xff]  ;;  %v271_v32 = vld [vmem:[%s1983_s19 + $0xf0] sm:$0xff] }
  0xcc   : > { %v2123_v57 = vpop.permute.xlu0 %589  ;;  %v687_v1 = vmul.f32 %v2086_v41, %v271_v32 }
  0xd2   : > { %1038 = vperm.xlu1 %1767, %v240_v31   ;;  %v683_v31 = vmul.f32 %v2086_v41, %v267_v19 }
  0xd3   : > { %v2128_v61 = vpop.permute.xlu1 %609 }
  0xd4   : > { %v915_v63 = vpop.permute.xlu2 %914  ;;  %v2143_v20 = vpop.permute.xlu0 %604 }
  0xd5   : > { %v1041_v9 = vadd.f32 %v915_v63, %v657_v2  ;;  %v1042_v10 = vadd.f32 %v915_v63, %v658_v3  ;;  %v1043_v11 = vadd.f32 %v915_v63, %v659_v4  ;;  %v1044_v13 = vadd.f32 %v915_v63, %v660_v6  ;;  %v281_v3 = vld [vmem:[%s1983_s19 + $0x140] sm:$0xff]  ;;  %v282_v4 = vld [vmem:[%s1983_s19 + $0x148] sm:$0xff] }
  0xd6   : > { %v1045_v15 = vadd.f32 %v915_v63, %v661_v8  ;;  %v1046_v21 = vadd.f32 %v915_v63, %v662_v12  ;;  %v1047_v24 = vadd.f32 %v915_v63, %v663_v14  ;;  %v1048_v26 = vadd.f32 %v915_v63, %v664_v16 }
  0xd7   : > { %1297 = vst [vmem:[%s2137_s21] sm:$0xff] %v1041_v9  ;;  %v686_v63 = vmul.f32 %v2086_v41, %v270_v28  ;;  %v688_v6 = vmul.f32 %v2086_v41, %v272_v39  ;;  %v284_v9 = vld [vmem:[%s1983_s19 + $0x158] sm:$0xff]  ;;  %v286_v41 = vld [vmem:[%s1983_s19 + $0x168] sm:$0xff]  ;;  %v698_v16 = vmul.f32 %v2072_v35, %v282_v4  ;;  %v305_v28 = vld [vmem:[%s1983_s19 + $0x200] sm:$0xff] }
  0xd8   : > { %1298 = vst [vmem:[%s2137_s21 + $0x8] sm:$0xff] %v1042_v10  ;;  %v700_v19 = vmul.f32 %v2072_v35, %v284_v9  ;;  %v307_v39 = vld [vmem:[%s1983_s19 + $0x210] sm:$0xff] }
  0xd9   : > { %1299 = vst [vmem:[%s2137_s21 + $0x10] sm:$0xff] %v1043_v11  ;;  %v285_v11 = vld [vmem:[%s1983_s19 + $0x160] sm:$0xff]  ;;  %v723_v4 = vmul.f32 %v2076_v36, %v307_v39  ;;  %v263_v39 = vld [vmem:[%s1983_s19 + $0xb0] sm:$0xff] }
  0xda   : > { %1300 = vst [vmem:[%s2137_s21 + $0x18] sm:$0xff] %v1044_v13  ;;  %v701_v23 = vmul.f32 %v2072_v35, %v285_v11  ;;  %v312_v11 = vld [vmem:[%s1983_s19 + $0x238] sm:$0xff] }
  0xdb   : > { %v2146_v22 = vpop.permute.xlu1 %624  ;;  %1301 = vst [vmem:[%s2137_s21 + $0x20] sm:$0xff] %v1045_v15  ;;  %v697_v15 = vmul.f32 %v2072_v35, %v281_v3  ;;  %v310_v3 = vld [vmem:[%s1983_s19 + $0x228] sm:$0xff] }
  0xdc   : > { %1302 = vst [vmem:[%s2137_s21 + $0x28] sm:$0xff] %v1046_v21  ;;  %v2177_v12 = vpop.permute.xlu0 %619  ;;  %v288_v21 = vld [vmem:[%s1983_s19 + $0x178] sm:$0xff] }
  0xdd   : > { %v927_v27 = vpop.permute.xlu2 %926  ;;  %1303 = vst [vmem:[%s2137_s21 + $0x30] sm:$0xff] %v1047_v24 }
  0xde   : > { %v1065_v59 = vadd.f32 %v927_v27, %v681_v29  ;;  %v1066_v60 = vadd.f32 %v927_v27, %v682_v30  ;;  %v1067_v62 = vadd.f32 %v927_v27, %v683_v31  ;;  %1304 = vst [vmem:[%s2137_s21 + $0x38] sm:$0xff] %v1048_v26  ;;  %v1068_v0 = vadd.f32 %v927_v27, %v684_v33  ;;  %v306_v31 = vld [vmem:[%s1983_s19 + $0x208] sm:$0xff] }
  0xdf   : > { %v1069_v2 = vadd.f32 %v927_v27, %v685_v58  ;;  %v1070_v7 = vadd.f32 %v927_v27, %v686_v63  ;;  %v1071_v10 = vadd.f32 %v927_v27, %v687_v1  ;;  %v1072_v13 = vadd.f32 %v927_v27, %v688_v6  ;;  %v311_v6 = vld [vmem:[%s1983_s19 + $0x230] sm:$0xff] }
  0xe0   : > { %1321 = vst [vmem:[%s2137_s21 + $0xc0] sm:$0xff] %v1065_v59  ;;  %v702_v27 = vmul.f32 %v2072_v35, %v286_v41  ;;  %v703_v30 = vmul.f32 %v2072_v35, %v287_v18  ;;  %v704_v33 = vmul.f32 %v2072_v35, %v288_v21  ;;  %v722_v1 = vmul.f32 %v2076_v36, %v306_v31  ;;  %v258_v18 = vld [vmem:[%s1983_s19 + $0x88] sm:$0xff] }
  0xe1   : > { %1322 = vst [vmem:[%s2137_s21 + $0xc8] sm:$0xff] %v1066_v60  ;;  %v308_v60 = vld [vmem:[%s1983_s19 + $0x218] sm:$0xff]  ;;  %v726_v41 = vmul.f32 %v2076_v36, %v310_v3  ;;  %v728_v21 = vmul.f32 %v2076_v36, %v312_v11 }
  0xe2   : > { %1323 = vst [vmem:[%s2137_s21 + $0xd0] sm:$0xff] %v1067_v62  ;;  %v721_v62 = vmul.f32 %v2076_v36, %v305_v28 }
  0xe3   : > { %v2172_v8 = vpop.permute.xlu1 %639  ;;  %1324 = vst [vmem:[%s2137_s21 + $0xd8] sm:$0xff] %v1068_v0  ;;  %v309_v0 = vld [vmem:[%s1983_s19 + $0x220] sm:$0xff] }
  0xe4   : > { %1325 = vst [vmem:[%s2137_s21 + $0xe0] sm:$0xff] %v1069_v2  ;;  %v2213_v9 = vpop.permute.xlu0 %634 }
  0xe5   : > { %v935_v14 = vpop.permute.xlu2 %934  ;;  %1326 = vst [vmem:[%s2137_s21 + $0xe8] sm:$0xff] %v1070_v7  ;;  %v724_v7 = vmul.f32 %v2076_v36, %v308_v60 }
  0xe6   : > { %1327 = vst [vmem:[%s2137_s21 + $0xf0] sm:$0xff] %v1071_v10  ;;  %v1081_v24 = vadd.f32 %v935_v14, %v697_v15  ;;  %v1082_v25 = vadd.f32 %v935_v14, %v698_v16  ;;  %v1083_v26 = vadd.f32 %v935_v14, %v699_v17  ;;  %v1084_v29 = vadd.f32 %v935_v14, %v700_v19  ;;  %v257_v15 = vld [vmem:[%s1983_s19 + $0x80] sm:$0xff] }
  0xe7   : > { %1328 = vst [vmem:[%s2137_s21 + $0xf8] sm:$0xff] %v1072_v13  ;;  %v1085_v32 = vadd.f32 %v935_v14, %v701_v23  ;;  %v1086_v58 = vadd.f32 %v935_v14, %v702_v27  ;;  %v1087_v63 = vadd.f32 %v935_v14, %v703_v30  ;;  %v1088_v2 = vadd.f32 %v935_v14, %v704_v33  ;;  %v259_v23 = vld [vmem:[%s1983_s19 + $0x90] sm:$0xff] }
  0xe8   : > { %1337 = vst [vmem:[%s2137_s21 + $0x140] sm:$0xff] %v1081_v24  ;;  %v725_v13 = vmul.f32 %v2076_v36, %v309_v0  ;;  %v727_v17 = vmul.f32 %v2076_v36, %v311_v6  ;;  %v674_v30 = vmul.f32 %v2081_v38, %v258_v18  ;;  %v262_v36 = vld [vmem:[%s1983_s19 + $0xa8] sm:$0xff] }
  0xe9   : > { %1338 = vst [vmem:[%s2137_s21 + $0x148] sm:$0xff] %v1082_v25  ;;  %v260_v25 = vld [vmem:[%s1983_s19 + $0x98] sm:$0xff] }
  0xea   : > { %1339 = vst [vmem:[%s2137_s21 + $0x150] sm:$0xff] %v1083_v26  ;;  %v673_v26 = vmul.f32 %v2081_v38, %v257_v15 }
  0xeb   : > { %v2200_v59 = vpop.permute.xlu1 %654  ;;  %1340 = vst [vmem:[%s2137_s21 + $0x158] sm:$0xff] %v1084_v29  ;;  %v261_v29 = vld [vmem:[%s1983_s19 + $0xa0] sm:$0xff] }
  0xec   : > { %1341 = vst [vmem:[%s2137_s21 + $0x160] sm:$0xff] %v1085_v32  ;;  %v675_v32 = vmul.f32 %v2081_v38, %v259_v23  ;;  %v335_v23 = vld [vmem:[%s1983_s19 + $0x2f0] sm:$0xff] }
  0xed   : > { %v947_v35 = vpop.permute.xlu2 %946  ;;  %1342 = vst [vmem:[%s2137_s21 + $0x168] sm:$0xff] %v1086_v58  ;;  %v676_v58 = vmul.f32 %v2081_v38, %v260_v25 }
  0xee   : > { %v1105_v5 = vadd.f32 %v947_v35, %v721_v62  ;;  %v1106_v10 = vadd.f32 %v947_v35, %v722_v1  ;;  %1343 = vst [vmem:[%s2137_s21 + $0x170] sm:$0xff] %v1087_v63  ;;  %v1107_v14 = vadd.f32 %v947_v35, %v723_v4  ;;  %v1108_v16 = vadd.f32 %v947_v35, %v724_v7  ;;  %v264_v62 = vld [vmem:[%s1983_s19 + $0xb8] sm:$0xff]  ;;  %v329_v1 = vld [vmem:[%s1983_s19 + $0x2c0] sm:$0xff]  ;;  %v330_v4 = vld [vmem:[%s1983_s19 + $0x2c8] sm:$0xff] }
  0xef   : > { %1344 = vst [vmem:[%s2137_s21 + $0x178] sm:$0xff] %v1088_v2  ;;  %v1109_v19 = vadd.f32 %v947_v35, %v725_v13  ;;  %v1110_v24 = vadd.f32 %v947_v35, %v726_v41  ;;  %v1111_v27 = vadd.f32 %v947_v35, %v727_v17  ;;  %v1112_v31 = vadd.f32 %v947_v35, %v728_v21  ;;  %v2245_v35 = vpop.permute.xlu0 %649  ;;  %v331_v7 = vld [vmem:[%s1983_s19 + $0x2d0] sm:$0xff] }
  0xf0   : > { %1361 = vst [vmem:[%s2137_s21 + $0x200] sm:$0xff] %v1105_v5  ;;  %v677_v63 = vmul.f32 %v2081_v38, %v261_v29  ;;  %v678_v2 = vmul.f32 %v2081_v38, %v262_v36  ;;  %v679_v5 = vmul.f32 %v2081_v38, %v263_v39  ;;  %v745_v41 = vmul.f32 %v2079_v37, %v329_v1 }
  0xf1   : > { %1362 = vst [vmem:[%s2137_s21 + $0x208] sm:$0xff] %v1106_v10  ;;  %v680_v10 = vmul.f32 %v2081_v38, %v264_v62  ;;  %v746_v17 = vmul.f32 %v2079_v37, %v330_v4  ;;  %v334_v38 = vld [vmem:[%s1983_s19 + $0x2e8] sm:$0xff]  ;;  %v751_v36 = vmul.f32 %v2079_v37, %v335_v23 }
  0xf2   : > { %1363 = vst [vmem:[%s2137_s21 + $0x210] sm:$0xff] %v1107_v14  ;;  %v332_v14 = vld [vmem:[%s1983_s19 + $0x2d8] sm:$0xff]  ;;  %v750_v29 = vmul.f32 %v2079_v37, %v334_v38 }
  0xf3   : > { %1364 = vst [vmem:[%s2137_s21 + $0x218] sm:$0xff] %v1108_v16  ;;  %v333_v16 = vld [vmem:[%s1983_s19 + $0x2e0] sm:$0xff] }
  0xf4   : > { %v923_v28 = vpop.permute.xlu1 %922  ;;  %1365 = vst [vmem:[%s2137_s21 + $0x220] sm:$0xff] %v1109_v19  ;;  %v747_v19 = vmul.f32 %v2079_v37, %v331_v7  ;;  %v255_v7 = vld [vmem:[%s1983_s19 + $0x70] sm:$0xff] }
  0xf5   : > { %v1057_v33 = vadd.f32 %v923_v28, %v673_v26  ;;  %1366 = vst [vmem:[%s2137_s21 + $0x228] sm:$0xff] %v1110_v24  ;;  %v1058_v60 = vadd.f32 %v923_v28, %v674_v30  ;;  %v1059_v0 = vadd.f32 %v923_v28, %v675_v32  ;;  %v1060_v3 = vadd.f32 %v923_v28, %v676_v58  ;;  %v959_v13 = vpop.permute.xlu2 %958  ;;  %v336_v26 = vld [vmem:[%s1983_s19 + $0x2f8] sm:$0xff]  ;;  %v249_v30 = vld [vmem:[%s1983_s19 + $0x40] sm:$0xff]  ;;  %v250_v32 = vld [vmem:[%s1983_s19 + $0x48] sm:$0xff] }
  0xf6   : > { %1367 = vst [vmem:[%s2137_s21 + $0x230] sm:$0xff] %v1111_v27  ;;  %v1061_v6 = vadd.f32 %v923_v28, %v677_v63  ;;  %v1062_v11 = vadd.f32 %v923_v28, %v678_v2  ;;  %v1063_v15 = vadd.f32 %v923_v28, %v679_v5  ;;  %v1064_v18 = vadd.f32 %v923_v28, %v680_v10  ;;  %v251_v58 = vld [vmem:[%s1983_s19 + $0x50] sm:$0xff]  ;;  %v252_v63 = vld [vmem:[%s1983_s19 + $0x58] sm:$0xff]  ;;  %v253_v2 = vld [vmem:[%s1983_s19 + $0x60] sm:$0xff] }
  0xf7   : > { %1368 = vst [vmem:[%s2137_s21 + $0x238] sm:$0xff] %v1112_v31  ;;  %v1129_v21 = vadd.f32 %v959_v13, %v745_v41  ;;  %v748_v24 = vmul.f32 %v2079_v37, %v332_v14  ;;  %v1130_v25 = vadd.f32 %v959_v13, %v746_v17  ;;  %v749_v27 = vmul.f32 %v2079_v37, %v333_v16  ;;  %v919_v62 = vpop.permute.xlu0 %918  ;;  %v256_v14 = vld [vmem:[%s1983_s19 + $0x78] sm:$0xff] }
  0xf8   : > { %1313 = vst [vmem:[%s2137_s21 + $0x80] sm:$0xff] %v1057_v33  ;;  %v1131_v28 = vadd.f32 %v959_v13, %v747_v19  ;;  %v752_v39 = vmul.f32 %v2079_v37, %v336_v26  ;;  %v1135_v1 = vadd.f32 %v959_v13, %v751_v36  ;;  %v254_v37 = vld [vmem:[%s1983_s19 + $0x68] sm:$0xff]  ;;  %v667_v5 = vmul.f32 %v2088_v42, %v251_v58  ;;  %v276_v26 = vld [vmem:[%s1983_s19 + $0x118] sm:$0xff] }
  0xf9   : > { %1314 = vst [vmem:[%s2137_s21 + $0x88] sm:$0xff] %v1058_v60  ;;  %v1132_v31 = vadd.f32 %v959_v13, %v748_v24  ;;  %v1133_v33 = vadd.f32 %v959_v13, %v749_v27  ;;  %v1134_v60 = vadd.f32 %v959_v13, %v750_v29  ;;  %v668_v10 = vmul.f32 %v2088_v42, %v252_v63  ;;  %v277_v29 = vld [vmem:[%s1983_s19 + $0x120] sm:$0xff] }
  0xfa   : > { %1315 = vst [vmem:[%s2137_s21 + $0x90] sm:$0xff] %v1059_v0  ;;  %v665_v0 = vmul.f32 %v2088_v42, %v249_v30  ;;  %v1136_v4 = vadd.f32 %v959_v13, %v752_v39  ;;  %v669_v41 = vmul.f32 %v2088_v42, %v253_v2  ;;  %v1051_v13 = vadd.f32 %v919_v62, %v667_v5 }
  0xfb   : > { %1316 = vst [vmem:[%s2137_s21 + $0x98] sm:$0xff] %v1060_v3  ;;  %v666_v3 = vmul.f32 %v2088_v42, %v250_v32  ;;  %v670_v16 = vmul.f32 %v2088_v42, %v254_v37  ;;  %v1052_v17 = vadd.f32 %v919_v62, %v668_v10  ;;  %v671_v38 = vmul.f32 %v2088_v42, %v255_v7 }
  0xfc   : > { %1317 = vst [vmem:[%s2137_s21 + $0xa0] sm:$0xff] %v1061_v6  ;;  %v1049_v6 = vadd.f32 %v919_v62, %v665_v0  ;;  %v1053_v19 = vadd.f32 %v919_v62, %v669_v41  ;;  %v672_v23 = vmul.f32 %v2088_v42, %v256_v14  ;;  %v278_v42 = vld [vmem:[%s1983_s19 + $0x128] sm:$0xff]  ;;  %v692_v39 = vmul.f32 %v2068_v34, %v276_v26 }
  0xfd   : > { %1318 = vst [vmem:[%s2137_s21 + $0xa8] sm:$0xff] %v1062_v11  ;;  %v1050_v11 = vadd.f32 %v919_v62, %v666_v3  ;;  %v1054_v24 = vadd.f32 %v919_v62, %v670_v16  ;;  %v693_v63 = vmul.f32 %v2068_v34, %v277_v29  ;;  %v694_v0 = vmul.f32 %v2068_v34, %v278_v42  ;;  %v971_v10 = vpop.permute.xlu2 %970 }
  0xfe   : > { %1319 = vst [vmem:[%s2137_s21 + $0xb0] sm:$0xff] %v1063_v15  ;;  %v273_v15 = vld [vmem:[%s1983_s19 + $0x100] sm:$0xff] }
  0xff   : > { %1320 = vst [vmem:[%s2137_s21 + $0xb8] sm:$0xff] %v1064_v18  ;;  %v274_v18 = vld [vmem:[%s1983_s19 + $0x108] sm:$0xff]  ;;  %v689_v27 = vmul.f32 %v2068_v34, %v273_v15 }
 0x100   : > { %1385 = vst [vmem:[%s2137_s21 + $0x2c0] sm:$0xff] %v1129_v21  ;;  %v275_v21 = vld [vmem:[%s1983_s19 + $0x110] sm:$0xff]  ;;  %v690_v30 = vmul.f32 %v2068_v34, %v274_v18 }
 0x101   : > { %1386 = vst [vmem:[%s2137_s21 + $0x2c8] sm:$0xff] %v1130_v25  ;;  %v931_v25 = vpop.permute.xlu1 %930  ;;  %v691_v36 = vmul.f32 %v2068_v34, %v275_v21 }
 0x102   : > { %1387 = vst [vmem:[%s2137_s21 + $0x2d0] sm:$0xff] %v1131_v28  ;;  %v1055_v28 = vadd.f32 %v919_v62, %v671_v38  ;;  %v1073_v32 = vadd.f32 %v931_v25, %v689_v27  ;;  %v1074_v58 = vadd.f32 %v931_v25, %v690_v30  ;;  %v1076_v2 = vadd.f32 %v931_v25, %v692_v39  ;;  %v359_v38 = vld [vmem:[%s1983_s19 + $0x3b0] sm:$0xff]  ;;  %v289_v27 = vld [vmem:[%s1983_s19 + $0x180] sm:$0xff]  ;;  %v290_v30 = vld [vmem:[%s1983_s19 + $0x188] sm:$0xff] }
 0x103   : > { %1388 = vst [vmem:[%s2137_s21 + $0x2d8] sm:$0xff] %v1132_v31  ;;  %v1056_v31 = vadd.f32 %v919_v62, %v672_v23  ;;  %v1075_v62 = vadd.f32 %v931_v25, %v691_v36  ;;  %v1077_v37 = vadd.f32 %v931_v25, %v693_v63  ;;  %v1078_v7 = vadd.f32 %v931_v25, %v694_v0  ;;  %v360_v23 = vld [vmem:[%s1983_s19 + $0x3b8] sm:$0xff]  ;;  %v291_v36 = vld [vmem:[%s1983_s19 + $0x190] sm:$0xff]  ;;  %v293_v63 = vld [vmem:[%s1983_s19 + $0x1a0] sm:$0xff] }
 0x104   : > { %1389 = vst [vmem:[%s2137_s21 + $0x2e0] sm:$0xff] %v1133_v33  ;;  %v279_v33 = vld [vmem:[%s1983_s19 + $0x130] sm:$0xff]  ;;  %v775_v29 = vmul.f32 %v2084_v40, %v359_v38  ;;  %v776_v42 = vmul.f32 %v2084_v40, %v360_v23  ;;  %v292_v39 = vld [vmem:[%s1983_s19 + $0x198] sm:$0xff]  ;;  %v301_v23 = vld [vmem:[%s1983_s19 + $0x1e0] sm:$0xff] }
 0x105   : > { %1390 = vst [vmem:[%s2137_s21 + $0x2e8] sm:$0xff] %v1134_v60  ;;  %v280_v60 = vld [vmem:[%s1983_s19 + $0x138] sm:$0xff]  ;;  %v695_v3 = vmul.f32 %v2068_v34, %v279_v33  ;;  %v939_v33 = vpop.permute.xlu0 %938 }
 0x106   : > { %1391 = vst [vmem:[%s2137_s21 + $0x2f0] sm:$0xff] %v1135_v1  ;;  %v353_v1 = vld [vmem:[%s1983_s19 + $0x380] sm:$0xff]  ;;  %v696_v5 = vmul.f32 %v2068_v34, %v280_v60  ;;  %v358_v34 = vld [vmem:[%s1983_s19 + $0x3a8] sm:$0xff]  ;;  %v1159_v60 = vadd.f32 %v971_v10, %v775_v29  ;;  %v1160_v0 = vadd.f32 %v971_v10, %v776_v42  ;;  %v300_v38 = vld [vmem:[%s1983_s19 + $0x1d8] sm:$0xff]  ;;  %v717_v42 = vmul.f32 %v2093_v44, %v301_v23 }
 0x107   : > { %1392 = vst [vmem:[%s2137_s21 + $0x2f8] sm:$0xff] %v1136_v4  ;;  %v354_v4 = vld [vmem:[%s1983_s19 + $0x388] sm:$0xff]  ;;  %v769_v14 = vmul.f32 %v2084_v40, %v353_v1  ;;  %v1079_v41 = vadd.f32 %v931_v25, %v695_v3  ;;  %v774_v26 = vmul.f32 %v2084_v40, %v358_v34  ;;  %v707_v1 = vmul.f32 %v2095_v45, %v291_v36  ;;  %v295_v3 = vld [vmem:[%s1983_s19 + $0x1b0] sm:$0xff] }
 0x108   : > { %1305 = vst [vmem:[%s2137_s21 + $0x40] sm:$0xff] %v1049_v6  ;;  %v355_v6 = vld [vmem:[%s1983_s19 + $0x390] sm:$0xff]  ;;  %v770_v15 = vmul.f32 %v2084_v40, %v354_v4  ;;  %v1080_v16 = vadd.f32 %v931_v25, %v696_v5  ;;  %v708_v4 = vmul.f32 %v2095_v45, %v292_v39  ;;  %v296_v5 = vld [vmem:[%s1983_s19 + $0x1b8] sm:$0xff]  ;;  %v716_v29 = vmul.f32 %v2093_v44, %v300_v38 }
 0x109   : > { %1306 = vst [vmem:[%s2137_s21 + $0x48] sm:$0xff] %v1050_v11  ;;  %v356_v11 = vld [vmem:[%s1983_s19 + $0x398] sm:$0xff]  ;;  %v1153_v18 = vadd.f32 %v971_v10, %v769_v14  ;;  %v712_v34 = vmul.f32 %v2095_v45, %v296_v5 }
 0x10a   : > { %1307 = vst [vmem:[%s2137_s21 + $0x50] sm:$0xff] %v1051_v13  ;;  %v357_v13 = vld [vmem:[%s1983_s19 + $0x3a0] sm:$0xff]  ;;  %v1154_v21 = vadd.f32 %v971_v10, %v770_v15  ;;  %v1092_v14 = vadd.f32 %v939_v33, %v708_v4 }
 0x10b   : > { %1308 = vst [vmem:[%s2137_s21 + $0x58] sm:$0xff] %v1052_v17  ;;  %v771_v17 = vmul.f32 %v2084_v40, %v355_v6  ;;  %v709_v6 = vmul.f32 %v2095_v45, %v293_v63 }
 0x10c   : > { %1309 = vst [vmem:[%s2137_s21 + $0x60] sm:$0xff] %v1053_v19  ;;  %v772_v19 = vmul.f32 %v2084_v40, %v356_v11 }
 0x10d   : > { %1310 = vst [vmem:[%s2137_s21 + $0x68] sm:$0xff] %v1054_v24  ;;  %v773_v24 = vmul.f32 %v2084_v40, %v357_v13  ;;  %v1155_v25 = vadd.f32 %v971_v10, %v771_v17  ;;  %v294_v40 = vld [vmem:[%s1983_s19 + $0x1a8] sm:$0xff]  ;;  %v711_v13 = vmul.f32 %v2095_v45, %v295_v3  ;;  %v1093_v15 = vadd.f32 %v939_v33, %v709_v6 }
 0x10e   : > { %1311 = vst [vmem:[%s2137_s21 + $0x70] sm:$0xff] %v1055_v28  ;;  %v1156_v28 = vadd.f32 %v971_v10, %v772_v19  ;;  %v710_v11 = vmul.f32 %v2095_v45, %v294_v40 }
 0x10f   : > { %1312 = vst [vmem:[%s2137_s21 + $0x78] sm:$0xff] %v1056_v31  ;;  %v1157_v31 = vadd.f32 %v971_v10, %v773_v24 }
 0x110   : > { %1329 = vst [vmem:[%s2137_s21 + $0x100] sm:$0xff] %v1073_v32  ;;  %v1158_v32 = vadd.f32 %v971_v10, %v774_v26  ;;  %v297_v10 = vld [vmem:[%s1983_s19 + $0x1c0] sm:$0xff]  ;;  %v1094_v17 = vadd.f32 %v939_v33, %v710_v11  ;;  %v383_v11 = vld [vmem:[%s1983_s19 + $0x470] sm:$0xff] }
 0x111   : > { %1330 = vst [vmem:[%s2137_s21 + $0x108] sm:$0xff] %v1074_v58  ;;  %v705_v58 = vmul.f32 %v2095_v45, %v289_v27  ;;  %v713_v19 = vmul.f32 %v2093_v44, %v297_v10  ;;  %v799_v38 = vmul.f32 %v2091_v43, %v383_v11  ;;  %v325_v11 = vld [vmem:[%s1983_s19 + $0x2a0] sm:$0xff] }
 0x112   : > { %1331 = vst [vmem:[%s2137_s21 + $0x110] sm:$0xff] %v1075_v62  ;;  %v706_v62 = vmul.f32 %v2095_v45, %v290_v30  ;;  %v302_v45 = vld [vmem:[%s1983_s19 + $0x1e8] sm:$0xff] }
 0x113   : > { %1332 = vst [vmem:[%s2137_s21 + $0x118] sm:$0xff] %v1076_v2  ;;  %v1089_v2 = vadd.f32 %v939_v33, %v705_v58  ;;  %v378_v58 = vld [vmem:[%s1983_s19 + $0x448] sm:$0xff] }
 0x114   : > { %1333 = vst [vmem:[%s2137_s21 + $0x120] sm:$0xff] %v1077_v37  ;;  %v1090_v37 = vadd.f32 %v939_v33, %v706_v62  ;;  %v379_v62 = vld [vmem:[%s1983_s19 + $0x450] sm:$0xff]  ;;  %v794_v5 = vmul.f32 %v2091_v43, %v378_v58  ;;  %v320_v58 = vld [vmem:[%s1983_s19 + $0x278] sm:$0xff] }
 0x115   : > { %1334 = vst [vmem:[%s2137_s21 + $0x128] sm:$0xff] %v1078_v7  ;;  %v1091_v7 = vadd.f32 %v939_v33, %v707_v1  ;;  %v983_v1 = vpop.permute.xlu2 %982 }
 0x116   : > { %1335 = vst [vmem:[%s2137_s21 + $0x130] sm:$0xff] %v1079_v41  ;;  %v298_v41 = vld [vmem:[%s1983_s19 + $0x1c8] sm:$0xff] }
 0x117   : > { %1336 = vst [vmem:[%s2137_s21 + $0x138] sm:$0xff] %v1080_v16  ;;  %v299_v16 = vld [vmem:[%s1983_s19 + $0x1d0] sm:$0xff]  ;;  %v714_v24 = vmul.f32 %v2093_v44, %v298_v41  ;;  %v1178_v41 = vadd.f32 %v983_v1, %v794_v5 }
 0x118   : > { %1409 = vst [vmem:[%s2137_s21 + $0x380] sm:$0xff] %v1153_v18  ;;  %v943_v18 = vpop.permute.xlu1 %942  ;;  %v715_v26 = vmul.f32 %v2093_v44, %v299_v16 }
 0x119   : > { %1410 = vst [vmem:[%s2137_s21 + $0x388] sm:$0xff] %v1154_v21  ;;  %v1095_v21 = vadd.f32 %v939_v33, %v711_v13  ;;  %v1097_v27 = vadd.f32 %v943_v18, %v713_v19  ;;  %v1098_v30 = vadd.f32 %v943_v18, %v714_v24  ;;  %v1100_v39 = vadd.f32 %v943_v18, %v716_v29  ;;  %v384_v13 = vld [vmem:[%s1983_s19 + $0x478] sm:$0xff]  ;;  %v314_v19 = vld [vmem:[%s1983_s19 + $0x248] sm:$0xff]  ;;  %v315_v24 = vld [vmem:[%s1983_s19 + $0x250] sm:$0xff] }
 0x11a   : > { %1411 = vst [vmem:[%s2137_s21 + $0x390] sm:$0xff] %v1155_v25  ;;  %v1096_v25 = vadd.f32 %v939_v33, %v712_v34  ;;  %v1099_v36 = vadd.f32 %v943_v18, %v715_v26  ;;  %v718_v33 = vmul.f32 %v2093_v44, %v302_v45  ;;  %v1101_v63 = vadd.f32 %v943_v18, %v717_v42  ;;  %v951_v45 = vpop.permute.xlu0 %950  ;;  %v316_v26 = vld [vmem:[%s1983_s19 + $0x258] sm:$0xff]  ;;  %v317_v29 = vld [vmem:[%s1983_s19 + $0x260] sm:$0xff] }
 0x11b   : > { %1412 = vst [vmem:[%s2137_s21 + $0x398] sm:$0xff] %v1156_v28  ;;  %v303_v28 = vld [vmem:[%s1983_s19 + $0x1f0] sm:$0xff]  ;;  %v800_v23 = vmul.f32 %v2091_v43, %v384_v13  ;;  %v731_v42 = vmul.f32 %v2102_v48, %v315_v24 }
 0x11c   : > { %1413 = vst [vmem:[%s2137_s21 + $0x3a0] sm:$0xff] %v1157_v31  ;;  %v304_v31 = vld [vmem:[%s1983_s19 + $0x1f8] sm:$0xff]  ;;  %v1102_v40 = vadd.f32 %v943_v18, %v718_v33  ;;  %v732_v33 = vmul.f32 %v2102_v48, %v316_v26 }
 0x11d   : > { %1414 = vst [vmem:[%s2137_s21 + $0x3a8] sm:$0xff] %v1158_v32  ;;  %v377_v32 = vld [vmem:[%s1983_s19 + $0x440] sm:$0xff] }
 0x11e   : > { %1415 = vst [vmem:[%s2137_s21 + $0x3b0] sm:$0xff] %v1159_v60  ;;  %v719_v60 = vmul.f32 %v2093_v44, %v303_v28  ;;  %v793_v3 = vmul.f32 %v2091_v43, %v377_v32  ;;  %v1183_v28 = vadd.f32 %v983_v1, %v799_v38  ;;  %v319_v32 = vld [vmem:[%s1983_s19 + $0x270] sm:$0xff]  ;;  %v741_v38 = vmul.f32 %v2100_v47, %v325_v11 }
 0x11f   : > { %1416 = vst [vmem:[%s2137_s21 + $0x3b8] sm:$0xff] %v1160_v0  ;;  %v720_v0 = vmul.f32 %v2093_v44, %v304_v31  ;;  %v382_v44 = vld [vmem:[%s1983_s19 + $0x468] sm:$0xff]  ;;  %v1184_v31 = vadd.f32 %v983_v1, %v800_v23 }
 0x120   : > { %1345 = vst [vmem:[%s2137_s21 + $0x180] sm:$0xff] %v1089_v2  ;;  %v380_v2 = vld [vmem:[%s1983_s19 + $0x458] sm:$0xff]  ;;  %v1103_v4 = vadd.f32 %v943_v18, %v719_v60  ;;  %v1177_v10 = vadd.f32 %v983_v1, %v793_v3  ;;  %v798_v34 = vmul.f32 %v2091_v43, %v382_v44  ;;  %v733_v60 = vmul.f32 %v2102_v48, %v317_v29 }
 0x121   : > { %1346 = vst [vmem:[%s2137_s21 + $0x188] sm:$0xff] %v1090_v37  ;;  %v381_v37 = vld [vmem:[%s1983_s19 + $0x460] sm:$0xff]  ;;  %v1104_v6 = vadd.f32 %v943_v18, %v720_v0  ;;  %v324_v44 = vld [vmem:[%s1983_s19 + $0x298] sm:$0xff] }
 0x122   : > { %1347 = vst [vmem:[%s2137_s21 + $0x190] sm:$0xff] %v1091_v7  ;;  %v795_v7 = vmul.f32 %v2091_v43, %v379_v62  ;;  %v321_v62 = vld [vmem:[%s1983_s19 + $0x280] sm:$0xff]  ;;  %v1117_v3 = vadd.f32 %v951_v45, %v733_v60  ;;  %v407_v60 = vld [vmem:[%s1983_s19 + $0x530] sm:$0xff]  ;;  %v963_v11 = vpop.permute.xlu0 %962 }
 0x123   : > { %1348 = vst [vmem:[%s2137_s21 + $0x198] sm:$0xff] %v1092_v14  ;;  %v796_v14 = vmul.f32 %v2091_v43, %v380_v2  ;;  %v735_v2 = vmul.f32 %v2102_v48, %v319_v32 }
 0x124   : > { %1349 = vst [vmem:[%s2137_s21 + $0x1a0] sm:$0xff] %v1093_v15  ;;  %v797_v15 = vmul.f32 %v2091_v43, %v381_v37  ;;  %v1179_v16 = vadd.f32 %v983_v1, %v795_v7  ;;  %v318_v43 = vld [vmem:[%s1983_s19 + $0x268] sm:$0xff]  ;;  %v736_v37 = vmul.f32 %v2102_v48, %v320_v58  ;;  %v737_v7 = vmul.f32 %v2100_v47, %v321_v62 }
 0x125   : > { %1350 = vst [vmem:[%s2137_s21 + $0x1a8] sm:$0xff] %v1094_v17  ;;  %v313_v17 = vld [vmem:[%s1983_s19 + $0x240] sm:$0xff]  ;;  %v1180_v18 = vadd.f32 %v983_v1, %v796_v14  ;;  %v734_v0 = vmul.f32 %v2102_v48, %v318_v43 }
 0x126   : > { %1351 = vst [vmem:[%s2137_s21 + $0x1b0] sm:$0xff] %v1095_v21  ;;  %v1181_v21 = vadd.f32 %v983_v1, %v797_v15 }
 0x127   : > { %1352 = vst [vmem:[%s2137_s21 + $0x1b8] sm:$0xff] %v1096_v25  ;;  %v1182_v25 = vadd.f32 %v983_v1, %v798_v34  ;;  %v322_v1 = vld [vmem:[%s1983_s19 + $0x288] sm:$0xff]  ;;  %v1118_v5 = vadd.f32 %v951_v45, %v734_v0  ;;  %v740_v34 = vmul.f32 %v2100_v47, %v324_v44  ;;  %v408_v0 = vld [vmem:[%s1983_s19 + $0x538] sm:$0xff] }
 0x128   : > { %1353 = vst [vmem:[%s2137_s21 + $0x1c0] sm:$0xff] %v1097_v27  ;;  %v729_v27 = vmul.f32 %v2102_v48, %v313_v17  ;;  %v738_v14 = vmul.f32 %v2100_v47, %v322_v1  ;;  %v824_v44 = vmul.f32 %v2098_v46, %v408_v0 }
 0x129   : > { %1354 = vst [vmem:[%s2137_s21 + $0x1c8] sm:$0xff] %v1098_v30  ;;  %v730_v30 = vmul.f32 %v2102_v48, %v314_v19  ;;  %v326_v48 = vld [vmem:[%s1983_s19 + $0x2a8] sm:$0xff] }
 0x12a   : > { %1355 = vst [vmem:[%s2137_s21 + $0x1d0] sm:$0xff] %v1099_v36  ;;  %v1113_v36 = vadd.f32 %v951_v45, %v729_v27  ;;  %v742_v23 = vmul.f32 %v2100_v47, %v326_v48  ;;  %v403_v27 = vld [vmem:[%s1983_s19 + $0x510] sm:$0xff] }
 0x12b   : > { %1356 = vst [vmem:[%s2137_s21 + $0x1d8] sm:$0xff] %v1100_v39  ;;  %v1114_v39 = vadd.f32 %v951_v45, %v730_v30  ;;  %v995_v30 = vpop.permute.xlu2 %994 }
 0x12c   : > { %1357 = vst [vmem:[%s2137_s21 + $0x1e0] sm:$0xff] %v1101_v63  ;;  %v1115_v63 = vadd.f32 %v951_v45, %v731_v42 }
 0x12d   : > { %1358 = vst [vmem:[%s2137_s21 + $0x1e8] sm:$0xff] %v1102_v40  ;;  %v1116_v40 = vadd.f32 %v951_v45, %v732_v33 }
 0x12e   : > { %1359 = vst [vmem:[%s2137_s21 + $0x1f0] sm:$0xff] %v1103_v4  ;;  %v323_v4 = vld [vmem:[%s1983_s19 + $0x290] sm:$0xff] }
 0x12f   : > { %1360 = vst [vmem:[%s2137_s21 + $0x1f8] sm:$0xff] %v1104_v6  ;;  %v955_v6 = vpop.permute.xlu1 %954  ;;  %v739_v13 = vmul.f32 %v2100_v47, %v323_v4 }
 0x130   : > { %1433 = vst [vmem:[%s2137_s21 + $0x440] sm:$0xff] %v1177_v10  ;;  %v1119_v10 = vadd.f32 %v951_v45, %v735_v2  ;;  %v1121_v15 = vadd.f32 %v955_v6, %v737_v7  ;;  %v1122_v17 = vadd.f32 %v955_v6, %v738_v14  ;;  %v1124_v24 = vadd.f32 %v955_v6, %v740_v34  ;;  %v339_v7 = vld [vmem:[%s1983_s19 + $0x310] sm:$0xff]  ;;  %v340_v14 = vld [vmem:[%s1983_s19 + $0x318] sm:$0xff] }
 0x131   : > { %1434 = vst [vmem:[%s2137_s21 + $0x448] sm:$0xff] %v1178_v41  ;;  %v1120_v41 = vadd.f32 %v951_v45, %v736_v37  ;;  %v1123_v19 = vadd.f32 %v955_v6, %v739_v13  ;;  %v1125_v26 = vadd.f32 %v955_v6, %v741_v38  ;;  %v1126_v29 = vadd.f32 %v955_v6, %v742_v23  ;;  %v341_v13 = vld [vmem:[%s1983_s19 + $0x320] sm:$0xff] }
 0x132   : > { %1435 = vst [vmem:[%s2137_s21 + $0x450] sm:$0xff] %v1179_v16  ;;  %v327_v16 = vld [vmem:[%s1983_s19 + $0x2b0] sm:$0xff]  ;;  %v823_v37 = vmul.f32 %v2098_v46, %v407_v60  ;;  %v755_v34 = vmul.f32 %v2109_v51, %v339_v7  ;;  %v756_v38 = vmul.f32 %v2109_v51, %v340_v14  ;;  %v757_v23 = vmul.f32 %v2109_v51, %v341_v13 }
 0x133   : > { %1436 = vst [vmem:[%s2137_s21 + $0x458] sm:$0xff] %v1180_v18  ;;  %v328_v18 = vld [vmem:[%s1983_s19 + $0x2b8] sm:$0xff]  ;;  %v743_v45 = vmul.f32 %v2100_v47, %v327_v16  ;;  %v1208_v16 = vadd.f32 %v995_v30, %v824_v44 }
 0x134   : > { %1437 = vst [vmem:[%s2137_s21 + $0x460] sm:$0xff] %v1181_v21  ;;  %v401_v21 = vld [vmem:[%s1983_s19 + $0x500] sm:$0xff]  ;;  %v1207_v48 = vadd.f32 %v995_v30, %v823_v37 }
 0x135   : > { %1438 = vst [vmem:[%s2137_s21 + $0x468] sm:$0xff] %v1182_v25  ;;  %v402_v25 = vld [vmem:[%s1983_s19 + $0x508] sm:$0xff]  ;;  %v817_v43 = vmul.f32 %v2098_v46, %v401_v21  ;;  %v1127_v42 = vadd.f32 %v955_v6, %v743_v45  ;;  %v344_v21 = vld [vmem:[%s1983_s19 + $0x338] sm:$0xff] }
 0x136   : > { %1439 = vst [vmem:[%s2137_s21 + $0x470] sm:$0xff] %v1183_v28  ;;  %v744_v28 = vmul.f32 %v2100_v47, %v328_v18  ;;  %v818_v32 = vmul.f32 %v2098_v46, %v402_v25  ;;  %v406_v47 = vld [vmem:[%s1983_s19 + $0x528] sm:$0xff]  ;;  %v343_v18 = vld [vmem:[%s1983_s19 + $0x330] sm:$0xff]  ;;  %v345_v25 = vld [vmem:[%s1983_s19 + $0x340] sm:$0xff] }
 0x137   : > { %1440 = vst [vmem:[%s2137_s21 + $0x478] sm:$0xff] %v1184_v31  ;;  %v404_v31 = vld [vmem:[%s1983_s19 + $0x518] sm:$0xff]  ;;  %v1201_v58 = vadd.f32 %v995_v30, %v817_v43  ;;  %v822_v2 = vmul.f32 %v2098_v46, %v406_v47  ;;  %v349_v47 = vld [vmem:[%s1983_s19 + $0x360] sm:$0xff] }
 0x138   : > { %1369 = vst [vmem:[%s2137_s21 + $0x240] sm:$0xff] %v1113_v36  ;;  %v405_v36 = vld [vmem:[%s1983_s19 + $0x520] sm:$0xff]  ;;  %v1128_v33 = vadd.f32 %v955_v6, %v744_v28  ;;  %v1202_v62 = vadd.f32 %v995_v30, %v818_v32  ;;  %v759_v28 = vmul.f32 %v2109_v51, %v343_v18  ;;  %v761_v32 = vmul.f32 %v2107_v50, %v345_v25 }
 0x139   : > { %1370 = vst [vmem:[%s2137_s21 + $0x248] sm:$0xff] %v1114_v39  ;;  %v819_v39 = vmul.f32 %v2098_v46, %v403_v27  ;;  %v346_v27 = vld [vmem:[%s1983_s19 + $0x348] sm:$0xff] }
 0x13a   : > { %1371 = vst [vmem:[%s2137_s21 + $0x250] sm:$0xff] %v1115_v63  ;;  %v820_v63 = vmul.f32 %v2098_v46, %v404_v31  ;;  %v760_v31 = vmul.f32 %v2109_v51, %v344_v21 }
 0x13b   : > { %1372 = vst [vmem:[%s2137_s21 + $0x258] sm:$0xff] %v1116_v40  ;;  %v821_v40 = vmul.f32 %v2098_v46, %v405_v36  ;;  %v1203_v1 = vadd.f32 %v995_v30, %v819_v39  ;;  %v342_v46 = vld [vmem:[%s1983_s19 + $0x328] sm:$0xff]  ;;  %v348_v36 = vld [vmem:[%s1983_s19 + $0x358] sm:$0xff]  ;;  %v762_v39 = vmul.f32 %v2107_v50, %v346_v27 }
 0x13c   : > { %1373 = vst [vmem:[%s2137_s21 + $0x260] sm:$0xff] %v1117_v3  ;;  %v337_v3 = vld [vmem:[%s1983_s19 + $0x300] sm:$0xff]  ;;  %v1204_v4 = vadd.f32 %v995_v30, %v820_v63  ;;  %v758_v45 = vmul.f32 %v2109_v51, %v342_v46  ;;  %v764_v0 = vmul.f32 %v2107_v50, %v348_v36  ;;  %v975_v36 = vpop.permute.xlu0 %974 }
 0x13d   : > { %1374 = vst [vmem:[%s2137_s21 + $0x268] sm:$0xff] %v1118_v5  ;;  %v338_v5 = vld [vmem:[%s1983_s19 + $0x308] sm:$0xff]  ;;  %v1205_v6 = vadd.f32 %v995_v30, %v821_v40 }
 0x13e   : > { %1375 = vst [vmem:[%s2137_s21 + $0x270] sm:$0xff] %v1119_v10  ;;  %v1206_v10 = vadd.f32 %v995_v30, %v822_v2  ;;  %v347_v30 = vld [vmem:[%s1983_s19 + $0x350] sm:$0xff]  ;;  %v1142_v43 = vadd.f32 %v963_v11, %v758_v45  ;;  %v765_v2 = vmul.f32 %v2107_v50, %v349_v47 }
 0x13f   : > { %1376 = vst [vmem:[%s2137_s21 + $0x278] sm:$0xff] %v1120_v41  ;;  %v753_v41 = vmul.f32 %v2109_v51, %v337_v3  ;;  %v763_v60 = vmul.f32 %v2107_v50, %v347_v30 }
 0x140   : > { %1377 = vst [vmem:[%s2137_s21 + $0x280] sm:$0xff] %v1121_v15  ;;  %v754_v15 = vmul.f32 %v2109_v51, %v338_v5  ;;  %v350_v51 = vld [vmem:[%s1983_s19 + $0x368] sm:$0xff] }
 0x141   : > { %1378 = vst [vmem:[%s2137_s21 + $0x288] sm:$0xff] %v1122_v17  ;;  %v1137_v17 = vadd.f32 %v963_v11, %v753_v41  ;;  %v766_v37 = vmul.f32 %v2107_v50, %v350_v51  ;;  %v1007_v41 = vpop.permute.xlu2 %1006 }
 0x142   : > { %1379 = vst [vmem:[%s2137_s21 + $0x290] sm:$0xff] %v1123_v19  ;;  %v1138_v19 = vadd.f32 %v963_v11, %v754_v15 }
 0x143   : > { %1380 = vst [vmem:[%s2137_s21 + $0x298] sm:$0xff] %v1124_v24  ;;  %v1139_v24 = vadd.f32 %v963_v11, %v755_v34 }
 0x144   : > { %1381 = vst [vmem:[%s2137_s21 + $0x2a0] sm:$0xff] %v1125_v26  ;;  %v1140_v26 = vadd.f32 %v963_v11, %v756_v38  ;;  %v431_v38 = vld [vmem:[%s1983_s19 + $0x5f0] sm:$0xff] }
 0x145   : > { %1382 = vst [vmem:[%s2137_s21 + $0x2a8] sm:$0xff] %v1126_v29  ;;  %v1141_v29 = vadd.f32 %v963_v11, %v757_v23  ;;  %v432_v23 = vld [vmem:[%s1983_s19 + $0x5f8] sm:$0xff] }
 0x146   : > { %1383 = vst [vmem:[%s2137_s21 + $0x2b0] sm:$0xff] %v1127_v42  ;;  %v967_v42 = vpop.permute.xlu1 %966 }
 0x147   : > { %1384 = vst [vmem:[%s2137_s21 + $0x2b8] sm:$0xff] %v1128_v33  ;;  %v1143_v33 = vadd.f32 %v963_v11, %v759_v28  ;;  %v1145_v63 = vadd.f32 %v967_v42, %v761_v32  ;;  %v1146_v40 = vadd.f32 %v967_v42, %v762_v39  ;;  %v1147_v3 = vadd.f32 %v967_v42, %v763_v60  ;;  %v364_v32 = vld [vmem:[%s1983_s19 + $0x3d8] sm:$0xff]  ;;  %v365_v39 = vld [vmem:[%s1983_s19 + $0x3e0] sm:$0xff] }
 0x148   : > { %1457 = vst [vmem:[%s2137_s21 + $0x500] sm:$0xff] %v1201_v58  ;;  %v1144_v58 = vadd.f32 %v963_v11, %v760_v31  ;;  %v1148_v5 = vadd.f32 %v967_v42, %v764_v0  ;;  %v1149_v7 = vadd.f32 %v967_v42, %v765_v2  ;;  %v1150_v14 = vadd.f32 %v967_v42, %v766_v37 }
 0x149   : > { %1458 = vst [vmem:[%s2137_s21 + $0x508] sm:$0xff] %v1202_v62  ;;  %v351_v62 = vld [vmem:[%s1983_s19 + $0x370] sm:$0xff]  ;;  %v847_v28 = vmul.f32 %v2105_v49, %v431_v38  ;;  %v848_v31 = vmul.f32 %v2105_v49, %v432_v23  ;;  %v780_v0 = vmul.f32 %v2116_v54, %v364_v32  ;;  %v781_v2 = vmul.f32 %v2116_v54, %v365_v39 }
 0x14a   : > { %1459 = vst [vmem:[%s2137_s21 + $0x510] sm:$0xff] %v1203_v1  ;;  %v352_v1 = vld [vmem:[%s1983_s19 + $0x378] sm:$0xff]  ;;  %v767_v44 = vmul.f32 %v2107_v50, %v351_v62  ;;  %v367_v62 = vld [vmem:[%s1983_s19 + $0x3f0] sm:$0xff] }
 0x14b   : > { %1460 = vst [vmem:[%s2137_s21 + $0x518] sm:$0xff] %v1204_v4  ;;  %v425_v4 = vld [vmem:[%s1983_s19 + $0x5c0] sm:$0xff]  ;;  %v768_v11 = vmul.f32 %v2107_v50, %v352_v1  ;;  %v430_v50 = vld [vmem:[%s1983_s19 + $0x5e8] sm:$0xff]  ;;  %v1231_v47 = vadd.f32 %v1007_v41, %v847_v28  ;;  %v1232_v51 = vadd.f32 %v1007_v41, %v848_v31  ;;  %v368_v1 = vld [vmem:[%s1983_s19 + $0x3f8] sm:$0xff] }
 0x14c   : > { %1461 = vst [vmem:[%s2137_s21 + $0x520] sm:$0xff] %v1205_v6  ;;  %v426_v6 = vld [vmem:[%s1983_s19 + $0x5c8] sm:$0xff]  ;;  %v841_v13 = vmul.f32 %v2105_v49, %v425_v4  ;;  %v1151_v15 = vadd.f32 %v967_v42, %v767_v44  ;;  %v846_v45 = vmul.f32 %v2105_v49, %v430_v50  ;;  %v369_v4 = vld [vmem:[%s1983_s19 + $0x400] sm:$0xff]  ;;  %v783_v44 = vmul.f32 %v2116_v54, %v367_v62 }
 0x14d   : > { %1462 = vst [vmem:[%s2137_s21 + $0x528] sm:$0xff] %v1206_v10  ;;  %v427_v10 = vld [vmem:[%s1983_s19 + $0x5d0] sm:$0xff]  ;;  %v842_v46 = vmul.f32 %v2105_v49, %v426_v6  ;;  %v1152_v34 = vadd.f32 %v967_v42, %v768_v11  ;;  %v370_v6 = vld [vmem:[%s1983_s19 + $0x408] sm:$0xff]  ;;  %v784_v11 = vmul.f32 %v2116_v54, %v368_v1 }
 0x14e   : > { %1463 = vst [vmem:[%s2137_s21 + $0x530] sm:$0xff] %v1207_v48  ;;  %v428_v48 = vld [vmem:[%s1983_s19 + $0x5d8] sm:$0xff]  ;;  %v1225_v18 = vadd.f32 %v1007_v41, %v841_v13  ;;  %v1230_v42 = vadd.f32 %v1007_v41, %v846_v45  ;;  %v785_v13 = vmul.f32 %v2114_v53, %v369_v4 }
 0x14f   : > { %1464 = vst [vmem:[%s2137_s21 + $0x538] sm:$0xff] %v1208_v16  ;;  %v429_v16 = vld [vmem:[%s1983_s19 + $0x5e0] sm:$0xff]  ;;  %v1226_v21 = vadd.f32 %v1007_v41, %v842_v46  ;;  %v786_v46 = vmul.f32 %v2114_v53, %v370_v6 }
 0x150   : > { %1393 = vst [vmem:[%s2137_s21 + $0x300] sm:$0xff] %v1137_v17  ;;  %v843_v17 = vmul.f32 %v2105_v49, %v427_v10  ;;  %v371_v10 = vld [vmem:[%s1983_s19 + $0x410] sm:$0xff] }
 0x151   : > { %1394 = vst [vmem:[%s2137_s21 + $0x308] sm:$0xff] %v1138_v19  ;;  %v844_v19 = vmul.f32 %v2105_v49, %v428_v48  ;;  %v372_v48 = vld [vmem:[%s1983_s19 + $0x418] sm:$0xff]  ;;  %v787_v50 = vmul.f32 %v2114_v53, %v371_v10 }
 0x152   : > { %1395 = vst [vmem:[%s2137_s21 + $0x310] sm:$0xff] %v1139_v24  ;;  %v845_v24 = vmul.f32 %v2105_v49, %v429_v16  ;;  %v1227_v25 = vadd.f32 %v1007_v41, %v843_v17  ;;  %v366_v49 = vld [vmem:[%s1983_s19 + $0x3e8] sm:$0xff]  ;;  %v373_v16 = vld [vmem:[%s1983_s19 + $0x420] sm:$0xff]  ;;  %v788_v38 = vmul.f32 %v2114_v53, %v372_v48 }
 0x153   : > { %1396 = vst [vmem:[%s2137_s21 + $0x318] sm:$0xff] %v1140_v26  ;;  %v361_v26 = vld [vmem:[%s1983_s19 + $0x3c0] sm:$0xff]  ;;  %v1228_v27 = vadd.f32 %v1007_v41, %v844_v19  ;;  %v782_v37 = vmul.f32 %v2116_v54, %v366_v49  ;;  %v789_v23 = vmul.f32 %v2114_v53, %v373_v16 }
 0x154   : > { %1397 = vst [vmem:[%s2137_s21 + $0x320] sm:$0xff] %v1141_v29  ;;  %v362_v29 = vld [vmem:[%s1983_s19 + $0x3c8] sm:$0xff]  ;;  %v1229_v30 = vadd.f32 %v1007_v41, %v845_v24  ;;  %v979_v41 = vpop.permute.xlu1 %978 }
 0x155   : > { %1398 = vst [vmem:[%s2137_s21 + $0x328] sm:$0xff] %v1142_v43  ;;  %v363_v43 = vld [vmem:[%s1983_s19 + $0x3d0] sm:$0xff]  ;;  %v1169_v17 = vadd.f32 %v979_v41, %v785_v13  ;;  %v1170_v19 = vadd.f32 %v979_v41, %v786_v46  ;;  %v1171_v24 = vadd.f32 %v979_v41, %v787_v50  ;;  %v389_v13 = vld [vmem:[%s1983_s19 + $0x4a0] sm:$0xff] }
 0x156   : > { %1399 = vst [vmem:[%s2137_s21 + $0x330] sm:$0xff] %v1143_v33  ;;  %v777_v33 = vmul.f32 %v2116_v54, %v361_v26  ;;  %v779_v60 = vmul.f32 %v2116_v54, %v363_v43  ;;  %v1172_v26 = vadd.f32 %v979_v41, %v788_v38  ;;  %v805_v38 = vmul.f32 %v2123_v57, %v389_v13 }
 0x157   : > { %1400 = vst [vmem:[%s2137_s21 + $0x338] sm:$0xff] %v1144_v58  ;;  %v778_v58 = vmul.f32 %v2116_v54, %v362_v29  ;;  %v374_v54 = vld [vmem:[%s1983_s19 + $0x428] sm:$0xff]  ;;  %v1173_v29 = vadd.f32 %v979_v41, %v789_v23 }
 0x158   : > { %1401 = vst [vmem:[%s2137_s21 + $0x340] sm:$0xff] %v1145_v63  ;;  %v1161_v63 = vadd.f32 %v975_v36, %v777_v33  ;;  %v790_v45 = vmul.f32 %v2114_v53, %v374_v54  ;;  %v391_v54 = vld [vmem:[%s1983_s19 + $0x4b0] sm:$0xff] }
 0x159   : > { %1402 = vst [vmem:[%s2137_s21 + $0x348] sm:$0xff] %v1146_v40  ;;  %v1162_v40 = vadd.f32 %v975_v36, %v778_v58 }
 0x15a   : > { %1403 = vst [vmem:[%s2137_s21 + $0x350] sm:$0xff] %v1147_v3  ;;  %v1163_v3 = vadd.f32 %v975_v36, %v779_v60  ;;  %v1174_v43 = vadd.f32 %v979_v41, %v790_v45  ;;  %v455_v60 = vld [vmem:[%s1983_s19 + $0x6b0] sm:$0xff]  ;;  %v807_v45 = vmul.f32 %v2123_v57, %v391_v54 }
 0x15b   : > { %1404 = vst [vmem:[%s2137_s21 + $0x358] sm:$0xff] %v1148_v5  ;;  %v1164_v5 = vadd.f32 %v975_v36, %v780_v0  ;;  %v456_v0 = vld [vmem:[%s1983_s19 + $0x6b8] sm:$0xff] }
 0x15c   : > { %1405 = vst [vmem:[%s2137_s21 + $0x360] sm:$0xff] %v1149_v7  ;;  %v1165_v7 = vadd.f32 %v975_v36, %v781_v2 }
 0x15d   : > { %1406 = vst [vmem:[%s2137_s21 + $0x368] sm:$0xff] %v1150_v14  ;;  %v1166_v14 = vadd.f32 %v975_v36, %v782_v37  ;;  %v871_v37 = vmul.f32 %v2112_v52, %v455_v60 }
 0x15e   : > { %1407 = vst [vmem:[%s2137_s21 + $0x370] sm:$0xff] %v1151_v15  ;;  %v1167_v15 = vadd.f32 %v975_v36, %v783_v44  ;;  %v872_v44 = vmul.f32 %v2112_v52, %v456_v0 }
 0x15f   : > { %1408 = vst [vmem:[%s2137_s21 + $0x378] sm:$0xff] %v1152_v34  ;;  %v1168_v34 = vadd.f32 %v975_v36, %v784_v11  ;;  %v452_v36 = vld [vmem:[%s1983_s19 + $0x698] sm:$0xff]  ;;  %v987_v11 = vpop.permute.xlu0 %986 }
 0x160   : > { %1481 = vst [vmem:[%s2137_s21 + $0x5c0] sm:$0xff] %v1225_v18  ;;  %v375_v18 = vld [vmem:[%s1983_s19 + $0x430] sm:$0xff] }
 0x161   : > { %1482 = vst [vmem:[%s2137_s21 + $0x5c8] sm:$0xff] %v1226_v21  ;;  %v376_v21 = vld [vmem:[%s1983_s19 + $0x438] sm:$0xff]  ;;  %v791_v28 = vmul.f32 %v2114_v53, %v375_v18 }
 0x162   : > { %1483 = vst [vmem:[%s2137_s21 + $0x5d0] sm:$0xff] %v1227_v25  ;;  %v449_v25 = vld [vmem:[%s1983_s19 + $0x680] sm:$0xff]  ;;  %v792_v31 = vmul.f32 %v2114_v53, %v376_v21  ;;  %v454_v53 = vld [vmem:[%s1983_s19 + $0x6a8] sm:$0xff]  ;;  %v392_v18 = vld [vmem:[%s1983_s19 + $0x4b8] sm:$0xff] }
 0x163   : > { %1484 = vst [vmem:[%s2137_s21 + $0x5d8] sm:$0xff] %v1228_v27  ;;  %v450_v27 = vld [vmem:[%s1983_s19 + $0x688] sm:$0xff]  ;;  %v865_v32 = vmul.f32 %v2112_v52, %v449_v25  ;;  %v1175_v33 = vadd.f32 %v979_v41, %v791_v28  ;;  %v870_v2 = vmul.f32 %v2112_v52, %v454_v53  ;;  %v393_v21 = vld [vmem:[%s1983_s19 + $0x4c0] sm:$0xff]  ;;  %v808_v28 = vmul.f32 %v2123_v57, %v392_v18 }
 0x164   : > { %1485 = vst [vmem:[%s2137_s21 + $0x5e0] sm:$0xff] %v1229_v30  ;;  %v451_v30 = vld [vmem:[%s1983_s19 + $0x690] sm:$0xff]  ;;  %v866_v39 = vmul.f32 %v2112_v52, %v450_v27  ;;  %v1176_v58 = vadd.f32 %v979_v41, %v792_v31  ;;  %v394_v25 = vld [vmem:[%s1983_s19 + $0x4c8] sm:$0xff]  ;;  %v396_v31 = vld [vmem:[%s1983_s19 + $0x4d8] sm:$0xff] }
 0x165   : > { %1486 = vst [vmem:[%s2137_s21 + $0x5e8] sm:$0xff] %v1230_v42  ;;  %v1019_v42 = vpop.permute.xlu2 %1018  ;;  %v395_v27 = vld [vmem:[%s1983_s19 + $0x4d0] sm:$0xff]  ;;  %v812_v53 = vmul.f32 %v2121_v56, %v396_v31 }
 0x166   : > { %1487 = vst [vmem:[%s2137_s21 + $0x5f0] sm:$0xff] %v1231_v47  ;;  %v453_v47 = vld [vmem:[%s1983_s19 + $0x6a0] sm:$0xff]  ;;  %v1249_v49 = vadd.f32 %v1019_v42, %v865_v32  ;;  %v1250_v62 = vadd.f32 %v1019_v42, %v866_v39  ;;  %v1254_v10 = vadd.f32 %v1019_v42, %v870_v2  ;;  %v1255_v48 = vadd.f32 %v1019_v42, %v871_v37 }
 0x167   : > { %1488 = vst [vmem:[%s2137_s21 + $0x5f8] sm:$0xff] %v1232_v51  ;;  %v867_v51 = vmul.f32 %v2112_v52, %v451_v30  ;;  %v1256_v16 = vadd.f32 %v1019_v42, %v872_v44  ;;  %v991_v30 = vpop.permute.xlu1 %990  ;;  %v810_v32 = vmul.f32 %v2121_v56, %v394_v25 }
 0x168   : > { %1417 = vst [vmem:[%s2137_s21 + $0x3c0] sm:$0xff] %v1161_v63  ;;  %v868_v63 = vmul.f32 %v2112_v52, %v452_v36  ;;  %v397_v36 = vld [vmem:[%s1983_s19 + $0x4e0] sm:$0xff]  ;;  %v1196_v0 = vadd.f32 %v991_v30, %v812_v53 }
 0x169   : > { %1418 = vst [vmem:[%s2137_s21 + $0x3c8] sm:$0xff] %v1162_v40  ;;  %v869_v40 = vmul.f32 %v2112_v52, %v453_v47  ;;  %v1251_v1 = vadd.f32 %v1019_v42, %v867_v51  ;;  %v390_v52 = vld [vmem:[%s1983_s19 + $0x4a8] sm:$0xff]  ;;  %v811_v47 = vmul.f32 %v2121_v56, %v395_v27  ;;  %v1194_v51 = vadd.f32 %v991_v30, %v810_v32 }
 0x16a   : > { %1419 = vst [vmem:[%s2137_s21 + $0x3d0] sm:$0xff] %v1163_v3  ;;  %v385_v3 = vld [vmem:[%s1983_s19 + $0x480] sm:$0xff]  ;;  %v1252_v4 = vadd.f32 %v1019_v42, %v868_v63  ;;  %v806_v23 = vmul.f32 %v2123_v57, %v390_v52  ;;  %v813_v60 = vmul.f32 %v2121_v56, %v397_v36  ;;  %v415_v36 = vld [vmem:[%s1983_s19 + $0x570] sm:$0xff] }
 0x16b   : > { %1420 = vst [vmem:[%s2137_s21 + $0x3d8] sm:$0xff] %v1164_v5  ;;  %v386_v5 = vld [vmem:[%s1983_s19 + $0x488] sm:$0xff]  ;;  %v1253_v6 = vadd.f32 %v1019_v42, %v869_v40  ;;  %v801_v41 = vmul.f32 %v2123_v57, %v385_v3  ;;  %v1191_v42 = vadd.f32 %v987_v11, %v807_v45  ;;  %v1195_v63 = vadd.f32 %v991_v30, %v811_v47  ;;  %v473_v40 = vld [vmem:[%s1983_s19 + $0x740] sm:$0xff]  ;;  %v999_v45 = vpop.permute.xlu0 %998 }
 0x16c   : > { %1421 = vst [vmem:[%s2137_s21 + $0x3e0] sm:$0xff] %v1165_v7  ;;  %v387_v7 = vld [vmem:[%s1983_s19 + $0x490] sm:$0xff]  ;;  %v1197_v2 = vadd.f32 %v991_v30, %v813_v60  ;;  %v474_v3 = vld [vmem:[%s1983_s19 + $0x748] sm:$0xff]  ;;  %v831_v60 = vmul.f32 %v2143_v20, %v415_v36 }
 0x16d   : > { %1422 = vst [vmem:[%s2137_s21 + $0x3e8] sm:$0xff] %v1166_v14  ;;  %v388_v14 = vld [vmem:[%s1983_s19 + $0x498] sm:$0xff]  ;;  %v803_v46 = vmul.f32 %v2123_v57, %v387_v7 }
 0x16e   : > { %1423 = vst [vmem:[%s2137_s21 + $0x3f0] sm:$0xff] %v1167_v15  ;;  %v802_v15 = vmul.f32 %v2123_v57, %v386_v5  ;;  %v804_v50 = vmul.f32 %v2123_v57, %v388_v14  ;;  %v398_v57 = vld [vmem:[%s1983_s19 + $0x4e8] sm:$0xff]  ;;  %v475_v5 = vld [vmem:[%s1983_s19 + $0x750] sm:$0xff]  ;;  %v476_v7 = vld [vmem:[%s1983_s19 + $0x758] sm:$0xff] }
 0x16f   : > { %1424 = vst [vmem:[%s2137_s21 + $0x3f8] sm:$0xff] %v1168_v34  ;;  %v1185_v34 = vadd.f32 %v987_v11, %v801_v41  ;;  %v477_v14 = vld [vmem:[%s1983_s19 + $0x760] sm:$0xff]  ;;  %v478_v41 = vld [vmem:[%s1983_s19 + $0x768] sm:$0xff] }
 0x170   : > { %1425 = vst [vmem:[%s2137_s21 + $0x400] sm:$0xff] %v1169_v17  ;;  %v1186_v17 = vadd.f32 %v987_v11, %v802_v15  ;;  %v479_v15 = vld [vmem:[%s1983_s19 + $0x770] sm:$0xff] }
 0x171   : > { %1426 = vst [vmem:[%s2137_s21 + $0x408] sm:$0xff] %v1170_v19  ;;  %v1187_v19 = vadd.f32 %v987_v11, %v803_v46  ;;  %v480_v46 = vld [vmem:[%s1983_s19 + $0x778] sm:$0xff] }
 0x172   : > { %1427 = vst [vmem:[%s2137_s21 + $0x410] sm:$0xff] %v1171_v24  ;;  %v1188_v24 = vadd.f32 %v987_v11, %v804_v50  ;;  %v409_v50 = vld [vmem:[%s1983_s19 + $0x540] sm:$0xff] }
 0x173   : > { %1428 = vst [vmem:[%s2137_s21 + $0x418] sm:$0xff] %v1172_v26  ;;  %v1189_v26 = vadd.f32 %v987_v11, %v805_v38  ;;  %v410_v38 = vld [vmem:[%s1983_s19 + $0x548] sm:$0xff]  ;;  %v825_v27 = vmul.f32 %v2143_v20, %v409_v50  ;;  %v435_v50 = vld [vmem:[%s1983_s19 + $0x610] sm:$0xff] }
 0x174   : > { %1429 = vst [vmem:[%s2137_s21 + $0x420] sm:$0xff] %v1173_v29  ;;  %v1190_v29 = vadd.f32 %v987_v11, %v806_v23  ;;  %v411_v23 = vld [vmem:[%s1983_s19 + $0x550] sm:$0xff] }
 0x175   : > { %1430 = vst [vmem:[%s2137_s21 + $0x428] sm:$0xff] %v1174_v43  ;;  %v809_v43 = vmul.f32 %v2121_v56, %v393_v21 }
 0x176   : > { %1431 = vst [vmem:[%s2137_s21 + $0x430] sm:$0xff] %v1175_v33  ;;  %v1192_v33 = vadd.f32 %v987_v11, %v808_v28 }
 0x177   : > { %1432 = vst [vmem:[%s2137_s21 + $0x438] sm:$0xff] %v1176_v58  ;;  %v1193_v39 = vadd.f32 %v991_v30, %v809_v43  ;;  %v399_v58 = vld [vmem:[%s1983_s19 + $0x4f0] sm:$0xff]  ;;  %v827_v43 = vmul.f32 %v2143_v20, %v411_v23  ;;  %v437_v23 = vld [vmem:[%s1983_s19 + $0x620] sm:$0xff] }
 0x178   : > { %1505 = vst [vmem:[%s2137_s21 + $0x680] sm:$0xff] %v1249_v49  ;;  %v400_v49 = vld [vmem:[%s1983_s19 + $0x4f8] sm:$0xff] }
 0x179   : > { %1506 = vst [vmem:[%s2137_s21 + $0x688] sm:$0xff] %v1250_v62  ;;  %v814_v62 = vmul.f32 %v2121_v56, %v398_v57  ;;  %v416_v57 = vld [vmem:[%s1983_s19 + $0x578] sm:$0xff] }
 0x17a   : > { %1507 = vst [vmem:[%s2137_s21 + $0x690] sm:$0xff] %v1251_v1  ;;  %v815_v1 = vmul.f32 %v2121_v56, %v399_v58  ;;  %v417_v58 = vld [vmem:[%s1983_s19 + $0x580] sm:$0xff] }
 0x17b   : > { %1508 = vst [vmem:[%s2137_s21 + $0x698] sm:$0xff] %v1252_v4  ;;  %v816_v4 = vmul.f32 %v2121_v56, %v400_v49  ;;  %v1198_v37 = vadd.f32 %v991_v30, %v814_v62  ;;  %v890_v56 = vmul.f32 %v2119_v55, %v474_v3  ;;  %v418_v49 = vld [vmem:[%s1983_s19 + $0x588] sm:$0xff]  ;;  %v419_v62 = vld [vmem:[%s1983_s19 + $0x590] sm:$0xff]  ;;  %v833_v3 = vmul.f32 %v2128_v61, %v417_v58 }
 0x17c   : > { %1509 = vst [vmem:[%s2137_s21 + $0x6a0] sm:$0xff] %v1253_v6  ;;  %v1031_v6 = vpop.permute.xlu2 %1030  ;;  %v1199_v44 = vadd.f32 %v991_v30, %v815_v1  ;;  %v1003_v1 = vpop.permute.xlu1 %1002 }
 0x17d   : > { %1510 = vst [vmem:[%s2137_s21 + $0x6a8] sm:$0xff] %v1254_v10  ;;  %v889_v10 = vmul.f32 %v2119_v55, %v473_v40  ;;  %v1200_v11 = vadd.f32 %v991_v30, %v816_v4  ;;  %v1274_v52 = vadd.f32 %v1031_v6, %v890_v56  ;;  %v826_v30 = vmul.f32 %v2143_v20, %v410_v38  ;;  %v424_v56 = vld [vmem:[%s1983_s19 + $0x5b8] sm:$0xff] }
 0x17e   : > { %1511 = vst [vmem:[%s2137_s21 + $0x6b0] sm:$0xff] %v1255_v48  ;;  %v891_v48 = vmul.f32 %v2119_v55, %v475_v5  ;;  %v1215_v4 = vadd.f32 %v999_v45, %v831_v60  ;;  %v834_v5 = vmul.f32 %v2128_v61, %v418_v49  ;;  %v436_v38 = vld [vmem:[%s1983_s19 + $0x618] sm:$0xff] }
 0x17f   : > { %1512 = vst [vmem:[%s2137_s21 + $0x6b8] sm:$0xff] %v1256_v16  ;;  %v1273_v13 = vadd.f32 %v1031_v6, %v889_v10  ;;  %v892_v16 = vmul.f32 %v2119_v55, %v476_v7  ;;  %v1217_v7 = vadd.f32 %v1003_v1, %v833_v3  ;;  %v423_v10 = vld [vmem:[%s1983_s19 + $0x5b0] sm:$0xff] }
 0x180   : > { %1441 = vst [vmem:[%s2137_s21 + $0x480] sm:$0xff] %v1185_v34  ;;  %v893_v34 = vmul.f32 %v2119_v55, %v477_v14  ;;  %v1275_v54 = vadd.f32 %v1031_v6, %v891_v48  ;;  %v1218_v14 = vadd.f32 %v1003_v1, %v834_v5 }
 0x181   : > { %1442 = vst [vmem:[%s2137_s21 + $0x488] sm:$0xff] %v1186_v17  ;;  %v894_v17 = vmul.f32 %v2119_v55, %v478_v41  ;;  %v1276_v18 = vadd.f32 %v1031_v6, %v892_v16 }
 0x182   : > { %1443 = vst [vmem:[%s2137_s21 + $0x490] sm:$0xff] %v1187_v19  ;;  %v895_v19 = vmul.f32 %v2119_v55, %v479_v15  ;;  %v1277_v21 = vadd.f32 %v1031_v6, %v893_v34  ;;  %v433_v15 = vld [vmem:[%s1983_s19 + $0x600] sm:$0xff] }
 0x183   : > { %1444 = vst [vmem:[%s2137_s21 + $0x498] sm:$0xff] %v1188_v24  ;;  %v896_v24 = vmul.f32 %v2119_v55, %v480_v46  ;;  %v1278_v25 = vadd.f32 %v1031_v6, %v894_v17  ;;  %v414_v55 = vld [vmem:[%s1983_s19 + $0x568] sm:$0xff] }
 0x184   : > { %1445 = vst [vmem:[%s2137_s21 + $0x4a0] sm:$0xff] %v1189_v26  ;;  %v412_v26 = vld [vmem:[%s1983_s19 + $0x558] sm:$0xff]  ;;  %v1279_v28 = vadd.f32 %v1031_v6, %v895_v19  ;;  %v830_v53 = vmul.f32 %v2143_v20, %v414_v55  ;;  %v434_v46 = vld [vmem:[%s1983_s19 + $0x608] sm:$0xff]  ;;  %v849_v19 = vmul.f32 %v2177_v12, %v433_v15 }
 0x185   : > { %1446 = vst [vmem:[%s2137_s21 + $0x4a8] sm:$0xff] %v1190_v29  ;;  %v413_v29 = vld [vmem:[%s1983_s19 + $0x560] sm:$0xff]  ;;  %v1280_v31 = vadd.f32 %v1031_v6, %v896_v24  ;;  %v828_v32 = vmul.f32 %v2143_v20, %v412_v26  ;;  %v850_v24 = vmul.f32 %v2177_v12, %v434_v46  ;;  %v460_v15 = vld [vmem:[%s1983_s19 + $0x6d8] sm:$0xff] }
 0x186   : > { %1447 = vst [vmem:[%s2137_s21 + $0x4b0] sm:$0xff] %v1191_v42  ;;  %v1209_v42 = vadd.f32 %v999_v45, %v825_v27  ;;  %v829_v47 = vmul.f32 %v2143_v20, %v413_v29  ;;  %v1214_v40 = vadd.f32 %v999_v45, %v830_v53  ;;  %v439_v27 = vld [vmem:[%s1983_s19 + $0x630] sm:$0xff]  ;;  %v1015_v53 = vpop.permute.xlu1 %1014  ;;  %v461_v46 = vld [vmem:[%s1983_s19 + $0x6e0] sm:$0xff] }
 0x187   : > { %1448 = vst [vmem:[%s2137_s21 + $0x4b8] sm:$0xff] %v1192_v33  ;;  %v1210_v33 = vadd.f32 %v999_v45, %v826_v30  ;;  %v440_v30 = vld [vmem:[%s1983_s19 + $0x638] sm:$0xff] }
 0x188   : > { %1449 = vst [vmem:[%s2137_s21 + $0x4c0] sm:$0xff] %v1193_v39  ;;  %v1211_v39 = vadd.f32 %v999_v45, %v827_v43  ;;  %v441_v43 = vld [vmem:[%s1983_s19 + $0x640] sm:$0xff] }
 0x189   : > { %1450 = vst [vmem:[%s2137_s21 + $0x4c8] sm:$0xff] %v1194_v51  ;;  %v1212_v51 = vadd.f32 %v999_v45, %v828_v32  ;;  %v442_v32 = vld [vmem:[%s1983_s19 + $0x648] sm:$0xff]  ;;  %v857_v49 = vmul.f32 %v2146_v22, %v441_v43  ;;  %v468_v43 = vld [vmem:[%s1983_s19 + $0x718] sm:$0xff] }
 0x18a   : > { %1451 = vst [vmem:[%s2137_s21 + $0x4d0] sm:$0xff] %v1195_v63  ;;  %v1213_v63 = vadd.f32 %v999_v45, %v829_v47  ;;  %v443_v47 = vld [vmem:[%s1983_s19 + $0x650] sm:$0xff] }
 0x18b   : > { %1452 = vst [vmem:[%s2137_s21 + $0x4d8] sm:$0xff] %v1196_v0  ;;  %v832_v0 = vmul.f32 %v2143_v20, %v416_v57  ;;  %v422_v20 = vld [vmem:[%s1983_s19 + $0x5a8] sm:$0xff] }
 0x18c   : > { %1453 = vst [vmem:[%s2137_s21 + $0x4e0] sm:$0xff] %v1197_v2  ;;  %v420_v2 = vld [vmem:[%s1983_s19 + $0x598] sm:$0xff] }
 0x18d   : > { %1454 = vst [vmem:[%s2137_s21 + $0x4e8] sm:$0xff] %v1198_v37  ;;  %v421_v37 = vld [vmem:[%s1983_s19 + $0x5a0] sm:$0xff]  ;;  %v1216_v6 = vadd.f32 %v999_v45, %v832_v0  ;;  %v851_v45 = vmul.f32 %v2177_v12, %v435_v50 }
 0x18e   : > { %1455 = vst [vmem:[%s2137_s21 + $0x4f0] sm:$0xff] %v1199_v44  ;;  %v835_v44 = vmul.f32 %v2128_v61, %v419_v62  ;;  %v837_v41 = vmul.f32 %v2128_v61, %v421_v37  ;;  %v858_v62 = vmul.f32 %v2146_v22, %v442_v32  ;;  %v448_v37 = vld [vmem:[%s1983_s19 + $0x678] sm:$0xff]  ;;  %v469_v32 = vld [vmem:[%s1983_s19 + $0x720] sm:$0xff] }
 0x18f   : > { %1456 = vst [vmem:[%s2137_s21 + $0x4f8] sm:$0xff] %v1200_v11  ;;  %v836_v11 = vmul.f32 %v2128_v61, %v420_v2  ;;  %v447_v2 = vld [vmem:[%s1983_s19 + $0x670] sm:$0xff] }
 0x190   : > { %1529 = vst [vmem:[%s2137_s21 + $0x740] sm:$0xff] %v1273_v13  ;;  %v1219_v48 = vadd.f32 %v1003_v1, %v835_v44  ;;  %v838_v13 = vmul.f32 %v2128_v61, %v422_v20  ;;  %v1221_v34 = vadd.f32 %v1003_v1, %v837_v41  ;;  %v457_v44 = vld [vmem:[%s1983_s19 + $0x6c0] sm:$0xff]  ;;  %v459_v41 = vld [vmem:[%s1983_s19 + $0x6d0] sm:$0xff] }
 0x191   : > { %1530 = vst [vmem:[%s2137_s21 + $0x748] sm:$0xff] %v1274_v52  ;;  %v1220_v16 = vadd.f32 %v1003_v1, %v836_v11  ;;  %v839_v52 = vmul.f32 %v2128_v61, %v423_v10  ;;  %v863_v10 = vmul.f32 %v2146_v22, %v447_v2  ;;  %v458_v11 = vld [vmem:[%s1983_s19 + $0x6c8] sm:$0xff]  ;;  %v875_v50 = vmul.f32 %v2213_v9, %v459_v41  ;;  %v487_v41 = vld [vmem:[%s1983_s19 + $0x7b0] sm:$0xff] }
 0x192   : > { %1531 = vst [vmem:[%s2137_s21 + $0x750] sm:$0xff] %v1275_v54  ;;  %v840_v54 = vmul.f32 %v2128_v61, %v424_v56  ;;  %v1222_v17 = vadd.f32 %v1003_v1, %v838_v13  ;;  %v438_v61 = vld [vmem:[%s1983_s19 + $0x628] sm:$0xff]  ;;  %v864_v56 = vmul.f32 %v2146_v22, %v448_v37  ;;  %v483_v37 = vld [vmem:[%s1983_s19 + $0x790] sm:$0xff] }
 0x193   : > { %1532 = vst [vmem:[%s2137_s21 + $0x758] sm:$0xff] %v1276_v18  ;;  %v1011_v18 = vpop.permute.xlu0 %1010  ;;  %v482_v2 = vld [vmem:[%s1983_s19 + $0x788] sm:$0xff] }
 0x194   : > { %1533 = vst [vmem:[%s2137_s21 + $0x760] sm:$0xff] %v1277_v21  ;;  %v1223_v21 = vadd.f32 %v1003_v1, %v839_v52  ;;  %v1233_v26 = vadd.f32 %v1011_v18, %v849_v19  ;;  %v1234_v29 = vadd.f32 %v1011_v18, %v850_v24  ;;  %v1235_v55 = vadd.f32 %v1011_v18, %v851_v45 }
 0x195   : > { %1534 = vst [vmem:[%s2137_s21 + $0x768] sm:$0xff] %v1278_v25  ;;  %v1224_v25 = vadd.f32 %v1003_v1, %v840_v54  ;;  %v1241_v1 = vadd.f32 %v1015_v53, %v857_v49  ;;  %v1247_v52 = vadd.f32 %v1015_v53, %v863_v10  ;;  %v1248_v54 = vadd.f32 %v1015_v53, %v864_v56  ;;  %v472_v49 = vld [vmem:[%s1983_s19 + $0x738] sm:$0xff]  ;;  %v485_v10 = vld [vmem:[%s1983_s19 + $0x7a0] sm:$0xff] }
 0x196   : > { %1535 = vst [vmem:[%s2137_s21 + $0x770] sm:$0xff] %v1279_v28  ;;  %v852_v28 = vmul.f32 %v2177_v12, %v436_v38  ;;  %v876_v38 = vmul.f32 %v2213_v9, %v460_v15  ;;  %v488_v15 = vld [vmem:[%s1983_s19 + $0x7b8] sm:$0xff] }
 0x197   : > { %1536 = vst [vmem:[%s2137_s21 + $0x778] sm:$0xff] %v1280_v31  ;;  %v853_v31 = vmul.f32 %v2177_v12, %v437_v23  ;;  %v877_v23 = vmul.f32 %v2213_v9, %v461_v46 }
 0x198   : > { %1465 = vst [vmem:[%s2137_s21 + $0x540] sm:$0xff] %v1209_v42  ;;  %v854_v42 = vmul.f32 %v2177_v12, %v438_v61  ;;  %v1236_v36 = vadd.f32 %v1011_v18, %v852_v28 }
 0x199   : > { %1466 = vst [vmem:[%s2137_s21 + $0x548] sm:$0xff] %v1210_v33  ;;  %v855_v33 = vmul.f32 %v2177_v12, %v439_v27  ;;  %v1237_v57 = vadd.f32 %v1011_v18, %v853_v31 }
 0x19a   : > { %1467 = vst [vmem:[%s2137_s21 + $0x550] sm:$0xff] %v1211_v39  ;;  %v856_v39 = vmul.f32 %v2177_v12, %v440_v30  ;;  %v1238_v58 = vadd.f32 %v1011_v18, %v854_v42  ;;  %v446_v12 = vld [vmem:[%s1983_s19 + $0x668] sm:$0xff] }
 0x19b   : > { %1468 = vst [vmem:[%s2137_s21 + $0x558] sm:$0xff] %v1212_v51  ;;  %v444_v51 = vld [vmem:[%s1983_s19 + $0x658] sm:$0xff]  ;;  %v1239_v60 = vadd.f32 %v1011_v18, %v855_v33  ;;  %v862_v20 = vmul.f32 %v2146_v22, %v446_v12  ;;  %v1023_v13 = vpop.permute.xlu0 %1022  ;;  %v481_v12 = vld [vmem:[%s1983_s19 + $0x780] sm:$0xff] }
 0x19c   : > { %1469 = vst [vmem:[%s2137_s21 + $0x560] sm:$0xff] %v1213_v63  ;;  %v445_v63 = vld [vmem:[%s1983_s19 + $0x660] sm:$0xff]  ;;  %v1240_v0 = vadd.f32 %v1011_v18, %v856_v39  ;;  %v860_v3 = vmul.f32 %v2146_v22, %v444_v51  ;;  %v463_v18 = vld [vmem:[%s1983_s19 + $0x6f0] sm:$0xff]  ;;  %v1259_v24 = vadd.f32 %v1023_v13, %v875_v50  ;;  %v1260_v45 = vadd.f32 %v1023_v13, %v876_v38 }
 0x19d   : > { %1470 = vst [vmem:[%s2137_s21 + $0x568] sm:$0xff] %v1214_v40  ;;  %v859_v40 = vmul.f32 %v2146_v22, %v443_v47  ;;  %v861_v5 = vmul.f32 %v2146_v22, %v445_v63  ;;  %v462_v22 = vld [vmem:[%s1983_s19 + $0x6e8] sm:$0xff]  ;;  %v879_v27 = vmul.f32 %v2213_v9, %v463_v18  ;;  %v1261_v28 = vadd.f32 %v1023_v13, %v877_v23 }
 0x19e   : > { %1471 = vst [vmem:[%s2137_s21 + $0x570] sm:$0xff] %v1215_v4  ;;  %v1242_v4 = vadd.f32 %v1015_v53, %v858_v62  ;;  %v878_v61 = vmul.f32 %v2213_v9, %v462_v22  ;;  %v903_v22 = vmul.f32 %v2245_v35, %v487_v41  ;;  %v904_v18 = vmul.f32 %v2245_v35, %v488_v15 }
 0x19f   : > { %1472 = vst [vmem:[%s2137_s21 + $0x578] sm:$0xff] %v1216_v6  ;;  %v1243_v6 = vadd.f32 %v1015_v53, %v859_v40 }
 0x1a0   : > { %1473 = vst [vmem:[%s2137_s21 + $0x580] sm:$0xff] %v1217_v7  ;;  %v1244_v7 = vadd.f32 %v1015_v53, %v860_v3  ;;  %v1262_v31 = vadd.f32 %v1023_v13, %v878_v61  ;;  %v888_v3 = vmul.f32 %v2172_v8, %v472_v49 }
 0x1a1   : > { %1474 = vst [vmem:[%s2137_s21 + $0x588] sm:$0xff] %v1218_v14  ;;  %v1245_v14 = vadd.f32 %v1015_v53, %v861_v5 }
 0x1a2   : > { %1475 = vst [vmem:[%s2137_s21 + $0x590] sm:$0xff] %v1219_v48  ;;  %v1246_v48 = vadd.f32 %v1015_v53, %v862_v20  ;;  %v884_v53 = vmul.f32 %v2172_v8, %v468_v43  ;;  %v484_v20 = vld [vmem:[%s1983_s19 + $0x798] sm:$0xff] }
 0x1a3   : > { %1476 = vst [vmem:[%s2137_s21 + $0x598] sm:$0xff] %v1220_v16  ;;  %v873_v16 = vmul.f32 %v2213_v9, %v457_v44  ;;  %v1035_v5 = vpop.permute.xlu0 %1034  ;;  %v897_v44 = vmul.f32 %v2245_v35, %v481_v12 }
 0x1a4   : > { %1477 = vst [vmem:[%s2137_s21 + $0x5a0] sm:$0xff] %v1221_v34  ;;  %v874_v34 = vmul.f32 %v2213_v9, %v458_v11  ;;  %v898_v11 = vmul.f32 %v2245_v35, %v482_v2  ;;  %v1287_v23 = vadd.f32 %v1035_v5, %v903_v22  ;;  %v1288_v61 = vadd.f32 %v1035_v5, %v904_v18 }
 0x1a5   : > { %1478 = vst [vmem:[%s2137_s21 + $0x5a8] sm:$0xff] %v1222_v17  ;;  %v1257_v17 = vadd.f32 %v1023_v13, %v873_v16  ;;  %v1281_v56 = vadd.f32 %v1035_v5, %v897_v44  ;;  %v901_v16 = vmul.f32 %v2245_v35, %v485_v10 }
 0x1a6   : > { %1479 = vst [vmem:[%s2137_s21 + $0x5b0] sm:$0xff] %v1223_v21  ;;  %v1258_v19 = vadd.f32 %v1023_v13, %v874_v34  ;;  %v464_v21 = vld [vmem:[%s1983_s19 + $0x6f8] sm:$0xff] }
 0x1a7   : > { %1480 = vst [vmem:[%s2137_s21 + $0x5b8] sm:$0xff] %v1224_v25  ;;  %v465_v25 = vld [vmem:[%s1983_s19 + $0x700] sm:$0xff]  ;;  %v880_v30 = vmul.f32 %v2213_v9, %v464_v21  ;;  %v470_v9 = vld [vmem:[%s1983_s19 + $0x728] sm:$0xff]  ;;  %v1285_v50 = vadd.f32 %v1035_v5, %v901_v16 }
 0x1a8   : > { %1489 = vst [vmem:[%s2137_s21 + $0x600] sm:$0xff] %v1233_v26  ;;  %v466_v26 = vld [vmem:[%s1983_s19 + $0x708] sm:$0xff]  ;;  %v881_v42 = vmul.f32 %v2172_v8, %v465_v25  ;;  %v886_v62 = vmul.f32 %v2172_v8, %v470_v9 }
 0x1a9   : > { %1490 = vst [vmem:[%s2137_s21 + $0x608] sm:$0xff] %v1234_v29  ;;  %v467_v29 = vld [vmem:[%s1983_s19 + $0x710] sm:$0xff]  ;;  %v882_v33 = vmul.f32 %v2172_v8, %v466_v26 }
 0x1aa   : > { %1491 = vst [vmem:[%s2137_s21 + $0x610] sm:$0xff] %v1235_v55  ;;  %v1027_v55 = vpop.permute.xlu1 %1026  ;;  %v883_v47 = vmul.f32 %v2172_v8, %v467_v29  ;;  %v495_v29 = vld [vmem:[%s1983_s19 + $0x7f0] sm:$0xff] }
 0x1ab   : > { %1492 = vst [vmem:[%s2137_s21 + $0x618] sm:$0xff] %v1236_v36  ;;  %v1263_v36 = vadd.f32 %v1023_v13, %v879_v27  ;;  %v1265_v39 = vadd.f32 %v1027_v55, %v881_v42  ;;  %v1266_v51 = vadd.f32 %v1027_v55, %v882_v33  ;;  %v911_v33 = vmul.f32 %v2200_v59, %v495_v29 }
 0x1ac   : > { %1493 = vst [vmem:[%s2137_s21 + $0x620] sm:$0xff] %v1237_v57  ;;  %v1264_v57 = vadd.f32 %v1023_v13, %v880_v30  ;;  %v1267_v63 = vadd.f32 %v1027_v55, %v883_v47  ;;  %v1282_v13 = vadd.f32 %v1035_v5, %v898_v11 }
 0x1ad   : > { %1494 = vst [vmem:[%s2137_s21 + $0x628] sm:$0xff] %v1238_v58  ;;  %v471_v58 = vld [vmem:[%s1983_s19 + $0x730] sm:$0xff] }
 0x1ae   : > { %1495 = vst [vmem:[%s2137_s21 + $0x630] sm:$0xff] %v1239_v60  ;;  %v885_v60 = vmul.f32 %v2172_v8, %v469_v32  ;;  %v887_v40 = vmul.f32 %v2172_v8, %v471_v58  ;;  %v486_v8 = vld [vmem:[%s1983_s19 + $0x7a8] sm:$0xff] }
 0x1af   : > { %1496 = vst [vmem:[%s2137_s21 + $0x638] sm:$0xff] %v1240_v0  ;;  %v1268_v0 = vadd.f32 %v1027_v55, %v884_v53  ;;  %v902_v46 = vmul.f32 %v2245_v35, %v486_v8 }
 0x1b0   : > { %1497 = vst [vmem:[%s2137_s21 + $0x640] sm:$0xff] %v1241_v1  ;;  %v1269_v1 = vadd.f32 %v1027_v55, %v885_v60 }
 0x1b1   : > { %1498 = vst [vmem:[%s2137_s21 + $0x648] sm:$0xff] %v1242_v4  ;;  %v1270_v4 = vadd.f32 %v1027_v55, %v886_v62  ;;  %v1286_v38 = vadd.f32 %v1035_v5, %v902_v46 }
 0x1b2   : > { %1499 = vst [vmem:[%s2137_s21 + $0x650] sm:$0xff] %v1243_v6  ;;  %v1271_v6 = vadd.f32 %v1027_v55, %v887_v40  ;;  %v1039_v21 = vpop.permute.xlu1 %1038 }
 0x1b3   : > { %1500 = vst [vmem:[%s2137_s21 + $0x658] sm:$0xff] %v1244_v7  ;;  %v1272_v7 = vadd.f32 %v1027_v55, %v888_v3  ;;  %v496_v55 = vld [vmem:[%s1983_s19 + $0x7f8] sm:$0xff] }
 0x1b4   : > { %1501 = vst [vmem:[%s2137_s21 + $0x660] sm:$0xff] %v1245_v14  ;;  %v899_v14 = vmul.f32 %v2245_v35, %v483_v37  ;;  %v912_v9 = vmul.f32 %v2200_v59, %v496_v55 }
 0x1b5   : > { %1502 = vst [vmem:[%s2137_s21 + $0x668] sm:$0xff] %v1246_v48  ;;  %v900_v48 = vmul.f32 %v2245_v35, %v484_v20  ;;  %v494_v35 = vld [vmem:[%s1983_s19 + $0x7e8] sm:$0xff] }
 0x1b6   : > { %1503 = vst [vmem:[%s2137_s21 + $0x670] sm:$0xff] %v1247_v52  ;;  %v1283_v52 = vadd.f32 %v1035_v5, %v899_v14  ;;  %v1296_v58 = vadd.f32 %v1039_v21, %v912_v9 }
 0x1b7   : > { %1504 = vst [vmem:[%s2137_s21 + $0x678] sm:$0xff] %v1248_v54  ;;  %v1284_v34 = vadd.f32 %v1035_v5, %v900_v48  ;;  %v489_v54 = vld [vmem:[%s1983_s19 + $0x7c0] sm:$0xff] }
 0x1b8   : > { %1513 = vst [vmem:[%s2137_s21 + $0x6c0] sm:$0xff] %v1257_v17  ;;  %v490_v17 = vld [vmem:[%s1983_s19 + $0x7c8] sm:$0xff]  ;;  %v905_v25 = vmul.f32 %v2200_v59, %v489_v54 }
 0x1b9   : > { %1514 = vst [vmem:[%s2137_s21 + $0x6c8] sm:$0xff] %v1258_v19  ;;  %v491_v19 = vld [vmem:[%s1983_s19 + $0x7d0] sm:$0xff]  ;;  %v906_v26 = vmul.f32 %v2200_v59, %v490_v17 }
 0x1ba   : > { %1515 = vst [vmem:[%s2137_s21 + $0x6d0] sm:$0xff] %v1259_v24  ;;  %v492_v24 = vld [vmem:[%s1983_s19 + $0x7d8] sm:$0xff]  ;;  %v907_v27 = vmul.f32 %v2200_v59, %v491_v19 }
 0x1bb   : > { %1516 = vst [vmem:[%s2137_s21 + $0x6d8] sm:$0xff] %v1260_v45  ;;  %v493_v45 = vld [vmem:[%s1983_s19 + $0x7e0] sm:$0xff]  ;;  %v908_v30 = vmul.f32 %v2200_v59, %v492_v24  ;;  %s1818_s19 = scalar_lea.hbm %s2946_s2, 4096 }
 0x1bc   : > { %1517 = vst [vmem:[%s2137_s21 + $0x6e0] sm:$0xff] %v1261_v28  ;;  %v1289_v28 = vadd.f32 %v1039_v21, %v905_v25  ;;  %v909_v43 = vmul.f32 %v2200_v59, %v493_v45  ;;  %v1291_v42 = vadd.f32 %v1039_v21, %v907_v27  ;;  %p1820_p10 = scmp.lt.s32.totalorder %s1818_s19, %s1814_s8 }
 0x1bd   : > { %1518 = vst [vmem:[%s2137_s21 + $0x6e8] sm:$0xff] %v1262_v31  ;;  %v1290_v31 = vadd.f32 %v1039_v21, %v906_v26  ;;  %v1292_v32 = vadd.f32 %v1039_v21, %v908_v30 }
 0x1be   : > { %1519 = vst [vmem:[%s2137_s21 + $0x6f0] sm:$0xff] %v1263_v36  ;;  %v910_v36 = vmul.f32 %v2200_v59, %v494_v35  ;;  %p1821_p13 = por %p1820_p10, %p1819_p8 }
 0x1bf   : > { %1520 = vst [vmem:[%s2137_s21 + $0x6f8] sm:$0xff] %v1264_v57  ;;  %v1293_v57 = vadd.f32 %v1039_v21, %v909_v43 }
 0x1c0   : > { %1521 = vst [vmem:[%s2137_s21 + $0x700] sm:$0xff] %v1265_v39  ;;  %v1294_v47 = vadd.f32 %v1039_v21, %v910_v36  ;;  %v1295_v39 = vadd.f32 %v1039_v21, %v911_v33  ;;  %p1822_p0 = pnand %p1821_p13, %p1817_p7 }
 0x1c1   : > { %1522 = vst [vmem:[%s2137_s21 + $0x708] sm:$0xff] %v1266_v51 }
 0x1c2   : > { %1523 = vst [vmem:[%s2137_s21 + $0x710] sm:$0xff] %v1267_v63 }
 0x1c3   : > { %1524 = vst [vmem:[%s2137_s21 + $0x718] sm:$0xff] %v1268_v0 }
 0x1c4   : > { %1525 = vst [vmem:[%s2137_s21 + $0x720] sm:$0xff] %v1269_v1 }
 0x1c5   : > { %1526 = vst [vmem:[%s2137_s21 + $0x728] sm:$0xff] %v1270_v4 }
 0x1c6   : > { %1527 = vst [vmem:[%s2137_s21 + $0x730] sm:$0xff] %v1271_v6 }
 0x1c7   : > { %1528 = vst [vmem:[%s2137_s21 + $0x738] sm:$0xff] %v1272_v7 }
 0x1c8   : > { %1537 = vst [vmem:[%s2137_s21 + $0x780] sm:$0xff] %v1281_v56 }
 0x1c9   : > { %1538 = vst [vmem:[%s2137_s21 + $0x788] sm:$0xff] %v1282_v13 }
 0x1ca   : > { %1539 = vst [vmem:[%s2137_s21 + $0x790] sm:$0xff] %v1283_v52 }
 0x1cb   : > { %1540 = vst [vmem:[%s2137_s21 + $0x798] sm:$0xff] %v1284_v34 }
 0x1cc   : > { %1541 = vst [vmem:[%s2137_s21 + $0x7a0] sm:$0xff] %v1285_v50 }
 0x1cd   : > { %1542 = vst [vmem:[%s2137_s21 + $0x7a8] sm:$0xff] %v1286_v38 }
 0x1ce   : > { %1543 = vst [vmem:[%s2137_s21 + $0x7b0] sm:$0xff] %v1287_v23 }
 0x1cf   : > { %1544 = vst [vmem:[%s2137_s21 + $0x7b8] sm:$0xff] %v1288_v61 }
 0x1d0   : > { %1545 = vst [vmem:[%s2137_s21 + $0x7c0] sm:$0xff] %v1289_v28 }
 0x1d1   : > { %1546 = vst [vmem:[%s2137_s21 + $0x7c8] sm:$0xff] %v1290_v31 }
 0x1d2   : > { %1547 = vst [vmem:[%s2137_s21 + $0x7d0] sm:$0xff] %v1291_v42 }
 0x1d3   : > { %1548 = vst [vmem:[%s2137_s21 + $0x7d8] sm:$0xff] %v1292_v32 }
 0x1d4   : > { %1549 = vst [vmem:[%s2137_s21 + $0x7e0] sm:$0xff] %v1293_v57 }
 0x1d5   : > { %1550 = vst [vmem:[%s2137_s21 + $0x7e8] sm:$0xff] %v1294_v47 }
 0x1d6   : > { %1551 = vst [vmem:[%s2137_s21 + $0x7f0] sm:$0xff] %v1295_v39 }
 0x1d7   : > { %1552 = vst [vmem:[%s2137_s21 + $0x7f8] sm:$0xff] %v1296_v58 }
 0x1d8   : > { %1825 = shalt.err (!%p1822_p0)
}
 0x1d9   : > { %s1886_s15 = smov 1024   ;;  %s1887_s26 = smov 64  }
 0x1da   : > { %1696 = dma.vmem_to_hbm [thread:$0]  (%p1954_p9), %s1570_s4, 32768, %s1572_s5, %s1554_s6, %s1886_s15, %s1886_s15, %s1887_s26  }
 0x1db PF: > { %s1586_s27 = sand.u32 1, %s1860_s9   ;;  %p1703_p1 = pnand %p1674_p12, %p1961_p11 }
 0x1dc   : > { %s1587_s28 = scalar_lea.sflag [#allocation4], %s1586_s27 }
 0x1dd   : > { %p1704_p2 = pneg %p1703_p1 }
 0x1df   : > { %1855 = dma.done.wait (%p1704_p2), %s1587_s28, 32768  }
 0x1e0   : > { %1857 = vsyncadd (%p1704_p2), %s1587_s28, 4294934528  ;;  %s18_s14 = sadd.s32 1, %s1880_s14   ;;  %s2951_s9 = smov %s1864_s10 }
 0x1e1   : > { %p15_p3 = scmp.ge.s32.totalorder %s18_s14, 4   ;;  %s2952_s10 = smov %s1868_s11 }
 0x1e2   : > { %s2953_s11 = smov %s1959_s23  ;;  %s2954_s12 = smov %s1876_s13 }
 0x1e3   : > { %s2955_s13 = smov %s2957_s17  ;;  %17 = sbr.rel (!%p15_p3) target bundleno = 6 (0x6), region = 76 }
 0x1e8   :  { %1593 = vsyncpa [#allocation3], 1 }
 0x1e9   :  { %1595 = vsyncpa [#allocation3 + $0x1], 1 }
 0x1ea   :  { %1596 = vsyncpa [#allocation4], 1 }
 0x1eb   :  { %1598 = vsyncpa [#allocation4 + $0x1], 1 }

</bundles_post_ra>
